<compile_context>
chip_gen: v7x
topology: tpu7x:2x2x1
jax: 0.10.0
libtpu: 0.0.40
codegen_flags: <defaults>
</compile_context>

<pallas_src>
import functools

import jax
import jax.numpy as jnp
from jax.experimental import pallas as pl
from jax.experimental.pallas import tpu as pltpu

_MIB = 1024 * 1024


# ----------------------------------------------------------------------------
# Pallas kernel
# ----------------------------------------------------------------------------
def _wavenet_kernel(
    x_ref,        # (BB, T, Cin)   input block (batch-blocked)
    w_in_ref,     # (K*Cin, H)     packed input causal conv weight
    b_in_ref,     # (1, H)
    w_dil_ref,    # (L, K*H, H)    packed dilated conv weights (stacked layers)
    b_dil_ref,    # (L, 1, H)
    w_res_ref,    # (L, H, H)      1x1 residual conv weights
    b_res_ref,    # (L, 1, H)
    w_skip_ref,   # (L, H, H)      1x1 skip conv weights
    b_skip_ref,   # (L, 1, H)
    w_end1_ref,   # (H, H)
    b_end1_ref,   # (1, H)
    w_end2_ref,   # (H, O)
    b_end2_ref,   # (1, O)
    out_ref,      # (BB, 1, O)
    h_halo_ref,   # (BB, T+pad, H) scratch, weight dtype, left halo is zeros
    *,
    num_layers: int,
    kernel_size: int,
    pad: int,
):
    BB, T, Cin = x_ref.shape
    H = w_in_ref.shape[1]
    K = kernel_size
    M = BB * T
    io_dtype = w_dil_ref.dtype            # matmul input dtype (f32 or bf16)

    def mm(a, w):
        # f32 accumulation regardless of the storage dtype of the operands.
        return jnp.dot(a.astype(w.dtype), w, preferred_element_type=jnp.float32)

    # ------------------- input causal conv (dilation 1) ---------------------
    x3 = x_ref[...].astype(jnp.float32)                       # (BB, T, Cin)

    def shift_time(a3, s):
        # Left-zero causal shift of a (BB, T, C) value by s steps (s < T).
        if s == 0:
            return a3
        z = jnp.zeros((BB, s, a3.shape[-1]), a3.dtype)
        return jnp.concatenate([z, a3[:, : T - s, :]], axis=1)

    in_taps = [k for k in range(K) if (K - 1 - k) < T]        # live taps only
    if K * Cin <= 4:
        # Contraction of K*Cin is far too small to feed the MXU: do the input
        # conv as a VPU broadcast-FMA instead of a degenerate matmul.
        w_in = w_in_ref[...].astype(jnp.float32)              # (K*Cin, H)
        h3 = jnp.zeros((BB, T, H), jnp.float32) + b_in_ref[...]
        for k in in_taps:
            xs = shift_time(x3, K - 1 - k)
            for c in range(Cin):
                h3 = h3 + xs[:, :, c:c + 1] * w_in[k * Cin + c, :].reshape(1, 1, H)
        h = h3.reshape(M, H)                                  # (M, H) f32
    else:
        taps = [shift_time(x3, K - 1 - k).reshape(M, Cin) for k in in_taps]
        packed = taps[0] if len(taps) == 1 else jnp.concatenate(taps, axis=-1)
        h = mm(packed, w_in_ref[...][in_taps[0] * Cin:, :]) + b_in_ref[...]

    # ------------------- residual layers -------------------------------------
    if pad > 0:
        # Zero the left halo once; every causal shift becomes a static slice.
        h_halo_ref[:, :pad, :] = jnp.zeros((BB, pad, H), io_dtype)

    skip_last = jnp.zeros((BB, H), jnp.float32)

    for i in range(num_layers):                               # static unroll
        d = K ** i
        shifts = [(K - 1 - k) * d for k in range(K)]
        live = [k for k in range(K) if shifts[k] < T]         # drop dead taps

        h_io = h.astype(io_dtype)                             # one cast / layer
        if any(shifts[k] > 0 for k in live):
            h_halo_ref[:, pad:pad + T, :] = h_io.reshape(BB, T, H)

        def tap(k):
            s = shifts[k]
            if s == 0:
                return h_io
            return h_halo_ref[:, pad - s:pad - s + T, :].reshape(M, H)

        w_i = w_dil_ref[i]                                    # (K*H, H)
        b_i = b_dil_ref[i]                                    # (1, H) f32

        if H >= 128 and len(live) > 1:
            # H already fills the MXU: accumulate one matmul per live tap and
            # never materialize the (M, K*H) packed slab.
            dil = jnp.zeros((M, H), jnp.float32) + b_i
            for k in live:
                dil = dil + mm(tap(k), w_i[k * H:(k + 1) * H, :])
        else:
            # Small H: pack live taps along channels so a single matmul has a
            # len(live)*H contraction.
            taps = [tap(k) for k in live]
            packed = taps[0] if len(taps) == 1 else jnp.concatenate(taps, axis=-1)
            dil = mm(packed, w_i[live[0] * H:, :]) + b_i

        # gated = tanh(dil) * sigmoid(dil) == (1 - u) / (1 + u*u), u = exp(-dil)
        # -> one EUP transcendental instead of two.  (pl.reciprocal(...,
        # approx=True) is a further knob if ~1e-3 relative error is acceptable.)
        u = jnp.exp(jnp.minimum(-dil, 30.0))                  # clamp: keep u*u finite
        gated = (1.0 - u) / (1.0 + u * u)

        gated_io = gated.astype(io_dtype)                     # one cast / layer
        h = h + (mm(gated_io, w_res_ref[i]) + b_res_ref[i])   # residual (f32)

        # Skip/end path: only the last time step ever reaches the output.
        gated_last = gated_io.reshape(BB, T, H)[:, T - 1, :]  # (BB, H)
        skip_last = skip_last + (mm(gated_last, w_skip_ref[i]) + b_skip_ref[i])

    e1 = jnp.maximum(mm(skip_last, w_end1_ref[...]) + b_end1_ref[...], 0.0)
    out = mm(e1, w_end2_ref[...]) + b_end2_ref[...]           # (BB, O)
    out_ref[...] = out.reshape(BB, 1, out.shape[-1]).astype(out_ref.dtype)


# ----------------------------------------------------------------------------
# Wrapper
# ----------------------------------------------------------------------------
def _physical_vmem_bytes():
    try:
        info = pltpu.get_tpu_info()
        for name in ("vmem_capacity_bytes", "vmem_size_bytes", "vmem_bytes"):
            v = getattr(info, name, None)
            if v:
                return int(v)
    except Exception:
        pass
    return 64 * _MIB          # v7x per-TensorCore size: safe floor everywhere


def wavenet_forward(x, packed, *, num_layers, kernel_size, batch_block=None):
    """x: (B, T, input_size) float32.  Returns (B, output_size) float32."""
    B, T, Cin = x.shape
    H = packed["w_in"].shape[1]
    O = packed["w_end2"].shape[1]
    K = kernel_size
    io_dtype = packed["w_dil"].dtype
    io_bytes = jnp.dtype(io_dtype).itemsize

    # Halo size = largest live causal shift, rounded to 8 sublanes so the
    # per-layer halo store is aligned.
    max_shift = (K - 1) * (K ** (num_layers - 1)) if num_layers > 0 else 0
    pad = min(max_shift, T - 1)
    if pad:
        pad = ((pad + 7) // 8) * 8

    weight_args = (
        packed["w_in"], packed["b_in"],
        packed["w_dil"], packed["b_dil"],
        packed["w_res"], packed["b_res"],
        packed["w_skip"], packed["b_skip"],
        packed["w_end1"], packed["b_end1"],
        packed["w_end2"], packed["b_end2"],
    )
    weight_bytes = sum(int(a.size) * a.dtype.itemsize for a in weight_args)

    # ---------------- VMEM budget -> vmem_limit_bytes + batch_block ---------
    vmem_limit = int(min(0.9 * _physical_vmem_bytes(), 128 * _MIB))

    def vmem_estimate(bb, weight_bufs):
        m = bb * T
        halo = bb * (T + pad) * H * io_bytes                       # scratch
        x_buf = 2 * bb * T * Cin * x.dtype.itemsize                # dbl-buffered in
        out_buf = 2 * bb * O * 4
        acts = m * H * 16 + m * H * min(K, 8) * io_bytes           # h/dil/u/gated + taps
        return weight_bufs * weight_bytes + halo + x_buf + out_buf + acts

    def pick_batch_block(weight_bufs):
        budget = vmem_limit - 2 * _MIB                             # headroom
        divisors = [d for d in range(1, B + 1) if B % d == 0]
        fits = [d for d in divisors if vmem_estimate(d, weight_bufs) <= budget]
        if not fits:
            fits = [1]
        # Keep >= 2 grid steps when B allows it: v7x has two TensorCores.
        multi = [d for d in fits if B // d >= 2]
        return max(multi) if multi else max(fits)

    flops = (
        2 * B * T * (K * Cin) * H                        # input causal conv
        + num_layers * 2 * B * T * (K * H) * H           # dilated convs
        + num_layers * 2 * B * T * H * H                 # residual 1x1 convs
        + num_layers * 2 * B * H * H                     # skip 1x1 (last step)
        + 2 * B * H * H + 2 * B * H * O                  # end convs (last step)
    )
    transcendentals = num_layers * B * T * H             # one exp per element
    bytes_accessed = weight_bytes + int(x.size) * x.dtype.itemsize + B * O * 4

    kernel = functools.partial(
        _wavenet_kernel, num_layers=num_layers, kernel_size=kernel_size, pad=pad)

    def build(single_buffer_weights):
        bb = batch_block or pick_batch_block(1 if single_buffer_weights else 2)
        assert B % bb == 0, "batch must be divisible by batch_block"
        grid = (B // bb,)

        def const_spec(arr):
            nd = arr.ndim
            idx = lambda i, _nd=nd: (0,) * _nd
            if single_buffer_weights:
                # Constant index_map => fetched once; a single buffer suffices.
                return pl.BlockSpec(arr.shape, idx, pipeline_mode=pl.Buffered(1))
            return pl.BlockSpec(arr.shape, idx)

        in_specs = [pl.BlockSpec((bb, T, Cin), lambda i: (i, 0, 0))]
        in_specs += [const_spec(a) for a in weight_args]

        return pl.pallas_call(
            kernel,
            out_shape=jax.ShapeDtypeStruct((B, 1, O), jnp.float32),
            grid_spec=pltpu.PrefetchScalarGridSpec(
                num_scalar_prefetch=0,
                grid=grid,
                in_specs=in_specs,
                out_specs=pl.BlockSpec((bb, 1, O), lambda i: (i, 0, 0)),
                scratch_shapes=[pltpu.VMEM((bb, T + pad, H), io_dtype)],
            ),
            compiler_params=pltpu.CompilerParams(
                dimension_semantics=("parallel",),        # batch blocks independent
                vmem_limit_bytes=vmem_limit,
            ),
            cost_estimate=pl.CostEstimate(
                flops=flops,
                transcendentals=transcendentals,
                bytes_accessed=bytes_accessed,
            ),
        )

    args = (x,) + weight_args
    try:
        out3 = build(True)(*args)
    except Exception:
        # pipeline_mode=pl.Buffered(1) not supported by this JAX build:
        # fall back to default (double-buffered) weight specs.
        out3 = build(False)(*args)
    return out3[:, 0, :]


# ----------------------------------------------------------------------------
# Parameter init (PyTorch Conv1d layout) and packing for the kernel
# ----------------------------------------------------------------------------
def init_torch_params(key, input_size, hidden, num_layers, output_size,
                      kernel_size):
    keys = iter(jax.random.split(key, 8 + 6 * num_layers))

    def conv_init(cout, cin, kw):
        bound = 1.0 / float((cin * kw) ** 0.5)
        w = jax.random.uniform(next(keys), (cout, cin, kw), jnp.float32,
                               -bound, bound)
        b = jax.random.uniform(next(keys), (cout,), jnp.float32, -bound, bound)
        return w, b

    p = {"dil_w": [], "dil_b": [], "res_w": [], "res_b": [],
         "skip_w": [], "skip_b": []}
    p["conv_in_w"], p["conv_in_b"] = conv_init(hidden, input_size, kernel_size)
    for _ in range(num_layers):
        w, b = conv_init(hidden, hidden, kernel_size)
        p["dil_w"].append(w); p["dil_b"].append(b)
        w, b = conv_init(hidden, hidden, 1)
        p["res_w"].append(w); p["res_b"].append(b)
        w, b = conv_init(hidden, hidden, 1)
        p["skip_w"].append(w); p["skip_b"].append(b)
    p["end1_w"], p["end1_b"] = conv_init(hidden, hidden, 1)
    p["end2_w"], p["end2_b"] = conv_init(output_size, hidden, 1)
    return p


def pack_params(tp, *, weights_dtype=jnp.float32, pad_hidden_multiple=None):
    """Pack PyTorch-layout conv weights into matmul-ready kernel operands.

    weights_dtype=jnp.bfloat16 halves weight VMEM/HBM traffic (accumulation
    stays f32; use a looser comparison tolerance, e.g. 2e-2).
    pad_hidden_multiple=128 (v5e) / 256 (v6e, v7x) zero-pads the hidden dim to
    an MXU-friendly multiple; padded channels stay exactly zero end to end.
    """
    tp = dict(tp)
    if pad_hidden_multiple:
        Hcur = tp["end1_w"].shape[0]
        Hp = -(-Hcur // pad_hidden_multiple) * pad_hidden_multiple
        dh = Hp - Hcur
        if dh:
            pad_o = lambda w: jnp.pad(w, ((0, dh), (0, 0), (0, 0)))
            pad_i = lambda w: jnp.pad(w, ((0, 0), (0, dh), (0, 0)))
            pad_b = lambda b: jnp.pad(b, ((0, dh),))
            tp["conv_in_w"] = pad_o(tp["conv_in_w"])
            tp["conv_in_b"] = pad_b(tp["conv_in_b"])
            for key in ("dil", "res", "skip"):
                tp[key + "_w"] = [pad_i(pad_o(w)) for w in tp[key + "_w"]]
                tp[key + "_b"] = [pad_b(b) for b in tp[key + "_b"]]
            tp["end1_w"] = pad_i(pad_o(tp["end1_w"]))
            tp["end1_b"] = pad_b(tp["end1_b"])
            tp["end2_w"] = pad_i(tp["end2_w"])        # output_size unchanged

    def pack_conv(w):   # (Cout, Cin, Kw) -> (Kw*Cin, Cout); rows = [tap0, tap1, ...]
        cout = w.shape[0]
        return jnp.transpose(w, (2, 1, 0)).reshape(-1, cout).astype(weights_dtype)

    def pack_1x1(w):    # (Cout, Cin, 1) -> (Cin, Cout)
        return jnp.transpose(w[:, :, 0]).astype(weights_dtype)

    def bias(b):
        return b.reshape(1, -1).astype(jnp.float32)

    return {
        "w_in": pack_conv(tp["conv_in_w"]), "b_in": bias(tp["conv_in_b"]),
        "w_dil": jnp.stack([pack_conv(w) for w in tp["dil_w"]]),
        "b_dil": jnp.stack([bias(b) for b in tp["dil_b"]]),
        "w_res": jnp.stack([pack_1x1(w) for w in tp["res_w"]]),
        "b_res": jnp.stack([bias(b) for b in tp["res_b"]]),
        "w_skip": jnp.stack([pack_1x1(w) for w in tp["skip_w"]]),
        "b_skip": jnp.stack([bias(b) for b in tp["skip_b"]]),
        "w_end1": pack_1x1(tp["end1_w"]), "b_end1": bias(tp["end1_b"]),
        "w_end2": pack_1x1(tp["end2_w"]), "b_end2": bias(tp["end2_b"]),
    }


# ----------------------------------------------------------------------------
# Pure-JAX reference (same causal left-pad semantics, PyTorch-layout weights)
# ----------------------------------------------------------------------------
def reference_forward(x, tp, *, num_layers, kernel_size):
    B, T, _ = x.shape
    K = kernel_size

    def causal_conv(a, w, b, dilation):
        Kw = w.shape[-1]
        y = jnp.zeros((a.shape[0], T, w.shape[0]), jnp.float32)
        for k in range(Kw):
            s = (Kw - 1 - k) * dilation
            if s == 0:
                a_s = a
            elif s >= T:
                a_s = jnp.zeros_like(a)
            else:
                a_s = jnp.pad(a, ((0, 0), (s, 0), (0, 0)))[:, :T, :]
            y = y + jnp.einsum("btc,oc->bto", a_s, w[:, :, k],
                               precision=jax.lax.Precision.HIGHEST)
        return y + b[None, None, :]

    h = causal_conv(x, tp["conv_in_w"], tp["conv_in_b"], 1)
    skips = []
    for i in range(num_layers):
        d = K ** i
        dil = causal_conv(h, tp["dil_w"][i], tp["dil_b"][i], d)
        gated = jnp.tanh(dil) * jax.nn.sigmoid(dil)
        h = h + causal_conv(gated, tp["res_w"][i], tp["res_b"][i], 1)
        skips.append(causal_conv(gated, tp["skip_w"][i], tp["skip_b"][i], 1))
    s = sum(skips)
    e1 = jax.nn.relu(causal_conv(s, tp["end1_w"], tp["end1_b"], 1))
    out = causal_conv(e1, tp["end2_w"], tp["end2_b"], 1)
    return out[:, -1, :]    # (B, output_size) == PyTorch x[:, :, -1]


# ----------------------------------------------------------------------------
if __name__ == "__main__":
    # Small shapes consistent with the module defaults (hidden shrunk to 32).
    B, T = 2, 8
    input_size, hidden, num_layers, output_size, kernel_size = 1, 32, 2, 1, 2

    key = jax.random.PRNGKey(0)
    k_param, k_x = jax.random.split(key)
    torch_params = init_torch_params(
        k_param, input_size, hidden, num_layers, output_size, kernel_size)
    packed = pack_params(torch_params)           # f32 weights for exact check
    x = jax.random.normal(k_x, (B, T, input_size), jnp.float32)

    out = wavenet_forward(x, packed, num_layers=num_layers,
                          kernel_size=kernel_size)
    out = jax.block_until_ready(out)

    ref = jax.block_until_ready(
        reference_forward(x, torch_params, num_layers=num_layers,
                          kernel_size=kernel_size))

    assert out.shape == (B, output_size), out.shape
    assert jnp.allclose(out, ref, atol=1e-4, rtol=1e-4), (out, ref)

    print("KERNEL_OK")
</pallas_src>

<mosaic_0001>
module attributes {stable_mosaic.version = 11 : i64} {
  func.func @_wavenet_kernel(%arg0: i32, %arg1: memref<1x8x1xf32, #tpu.memory_space<vmem>>, %arg2: memref<2x32xf32, #tpu.memory_space<vmem>>, %arg3: memref<1x32xf32, #tpu.memory_space<vmem>>, %arg4: memref<2x64x32xf32, #tpu.memory_space<vmem>>, %arg5: memref<2x1x32xf32, #tpu.memory_space<vmem>>, %arg6: memref<2x32x32xf32, #tpu.memory_space<vmem>>, %arg7: memref<2x1x32xf32, #tpu.memory_space<vmem>>, %arg8: memref<2x32x32xf32, #tpu.memory_space<vmem>>, %arg9: memref<2x1x32xf32, #tpu.memory_space<vmem>>, %arg10: memref<32x32xf32, #tpu.memory_space<vmem>>, %arg11: memref<1x32xf32, #tpu.memory_space<vmem>>, %arg12: memref<32x1xf32, #tpu.memory_space<vmem>>, %arg13: memref<1x1xf32, #tpu.memory_space<vmem>>, %arg14: memref<1x1x1xf32, #tpu.memory_space<vmem>>, %arg15: memref<1x16x32xf32, #tpu.memory_space<vmem>>) attributes {dimension_semantics = [#tpu.dimension_semantics<parallel>], iteration_bounds = array<i64: 2>, scalar_prefetch = 0 : i64, scratch_operands = 1 : i64, tpu.core_type = #tpu.core_type<tc>, window_params = [{transform_indices = @transform_0, window_bounds = array<i64: 1, 8, 1>}, {pipeline_mode = #tpu.pipeline_mode<synchronous>, transform_indices = @transform_1, window_bounds = array<i64: 2, 32>}, {pipeline_mode = #tpu.pipeline_mode<synchronous>, transform_indices = @transform_2, window_bounds = array<i64: 1, 32>}, {pipeline_mode = #tpu.pipeline_mode<synchronous>, transform_indices = @transform_3, window_bounds = array<i64: 2, 64, 32>}, {pipeline_mode = #tpu.pipeline_mode<synchronous>, transform_indices = @transform_4, window_bounds = array<i64: 2, 1, 32>}, {pipeline_mode = #tpu.pipeline_mode<synchronous>, transform_indices = @transform_5, window_bounds = array<i64: 2, 32, 32>}, {pipeline_mode = #tpu.pipeline_mode<synchronous>, transform_indices = @transform_6, window_bounds = array<i64: 2, 1, 32>}, {pipeline_mode = #tpu.pipeline_mode<synchronous>, transform_indices = @transform_7, window_bounds = array<i64: 2, 32, 32>}, {pipeline_mode = #tpu.pipeline_mode<synchronous>, transform_indices = @transform_8, window_bounds = array<i64: 2, 1, 32>}, {pipeline_mode = #tpu.pipeline_mode<synchronous>, transform_indices = @transform_9, window_bounds = array<i64: 32, 32>}, {pipeline_mode = #tpu.pipeline_mode<synchronous>, transform_indices = @transform_10, window_bounds = array<i64: 1, 32>}, {pipeline_mode = #tpu.pipeline_mode<synchronous>, transform_indices = @transform_11, window_bounds = array<i64: 32, 1>}, {pipeline_mode = #tpu.pipeline_mode<synchronous>, transform_indices = @transform_12, window_bounds = array<i64: 1, 1>}, {transform_indices = @transform_13, window_bounds = array<i64: 1, 1, 1>}]} {
    %c0 = arith.constant 0 : index
    %c0_0 = arith.constant 0 : index
    %c0_1 = arith.constant 0 : index
    %0 = vector.load %arg1[%c0, %c0_0, %c0_1] : memref<1x8x1xf32, #tpu.memory_space<vmem>>, vector<1x8x1xf32>
    %c0_2 = arith.constant 0 : index
    %c0_3 = arith.constant 0 : index
    %1 = vector.load %arg2[%c0_2, %c0_3] : memref<2x32xf32, #tpu.memory_space<vmem>>, vector<2x32xf32>
    %cst = arith.constant 0.000000e+00 : f32
    %2 = vector.broadcast %cst : f32 to vector<1x8x32xf32>
    %c0_4 = arith.constant 0 : index
    %c0_5 = arith.constant 0 : index
    %3 = vector.load %arg3[%c0_4, %c0_5] : memref<1x32xf32, #tpu.memory_space<vmem>>, vector<1x32xf32>
    %4 = vector.shape_cast %3 : vector<1x32xf32> to vector<1x1x32xf32>
    %5 = vector.broadcast %4 : vector<1x1x32xf32> to vector<1x8x32xf32>
    %6 = arith.addf %2, %5 : vector<1x8x32xf32>
    %cst_6 = arith.constant 0.000000e+00 : f32
    %7 = vector.broadcast %cst_6 : f32 to vector<1x1x1xf32>
    %8 = vector.extract_strided_slice %0 {offsets = [0, 0, 0], sizes = [1, 7, 1], strides = [1, 1, 1]} : vector<1x8x1xf32> to vector<1x7x1xf32>
    %9 = tpu.concatenate %7, %8 in 1 : vector<1x1x1xf32>, vector<1x7x1xf32> -> vector<1x8x1xf32>
    %10 = vector.extract_strided_slice %1 {offsets = [0, 0], sizes = [1, 32], strides = [1, 1]} : vector<2x32xf32> to vector<1x32xf32>
    %11 = vector.shape_cast %10 : vector<1x32xf32> to vector<32xf32>
    %12 = vector.shape_cast %11 : vector<32xf32> to vector<1x1x32xf32>
    %13 = vector.broadcast %9 : vector<1x8x1xf32> to vector<1x8x32xf32>
    %14 = vector.broadcast %12 : vector<1x1x32xf32> to vector<1x8x32xf32>
    %15 = arith.mulf %13, %14 : vector<1x8x32xf32>
    %16 = arith.addf %6, %15 : vector<1x8x32xf32>
    %17 = vector.extract_strided_slice %1 {offsets = [1, 0], sizes = [1, 32], strides = [1, 1]} : vector<2x32xf32> to vector<1x32xf32>
    %18 = vector.shape_cast %17 : vector<1x32xf32> to vector<32xf32>
    %19 = vector.shape_cast %18 : vector<32xf32> to vector<1x1x32xf32>
    %20 = vector.broadcast %0 : vector<1x8x1xf32> to vector<1x8x32xf32>
    %21 = vector.broadcast %19 : vector<1x1x32xf32> to vector<1x8x32xf32>
    %22 = arith.mulf %20, %21 : vector<1x8x32xf32>
    %23 = arith.addf %16, %22 : vector<1x8x32xf32>
    %24 = vector.shape_cast %23 : vector<1x8x32xf32> to vector<8x32xf32>
    %cst_7 = arith.constant 0.000000e+00 : f32
    %25 = vector.broadcast %cst_7 : f32 to vector<1x8x32xf32>
    %c0_8 = arith.constant 0 : index
    %c0_9 = arith.constant 0 : index
    %c0_10 = arith.constant 0 : index
    %26 = vector.load %arg15[%c0_8, %c0_9, %c0_10] : memref<1x16x32xf32, #tpu.memory_space<vmem>>, vector<1x8x32xf32>
    tpu.vector_store %arg15[%c0_8, %c0_9, %c0_10], %25 {strides = array<i32>} : memref<1x16x32xf32, #tpu.memory_space<vmem>>, vector<1x8x32xf32>,
    %cst_11 = arith.constant 0.000000e+00 : f32
    %27 = vector.broadcast %cst_11 : f32 to vector<1x32xf32>
    %28 = vector.shape_cast %24 : vector<8x32xf32> to vector<1x8x32xf32>
    %c0_12 = arith.constant 0 : index
    %c8 = arith.constant 8 : index
    %c0_13 = arith.constant 0 : index
    %29 = vector.load %arg15[%c0_12, %c8, %c0_13] : memref<1x16x32xf32, #tpu.memory_space<vmem>>, vector<1x8x32xf32>
    tpu.vector_store %arg15[%c0_12, %c8, %c0_13], %28 {strides = array<i32>} : memref<1x16x32xf32, #tpu.memory_space<vmem>>, vector<1x8x32xf32>,
    %c0_14 = arith.constant 0 : index
    %c0_15 = arith.constant 0 : index
    %c0_16 = arith.constant 0 : index
    %30 = vector.load %arg4[%c0_14, %c0_15, %c0_16] : memref<2x64x32xf32, #tpu.memory_space<vmem>>, vector<1x64x32xf32>
    %31 = vector.shape_cast %30 : vector<1x64x32xf32> to vector<64x32xf32>
    %c0_17 = arith.constant 0 : index
    %c0_18 = arith.constant 0 : index
    %c0_19 = arith.constant 0 : index
    %32 = vector.load %arg5[%c0_17, %c0_18, %c0_19] : memref<2x1x32xf32, #tpu.memory_space<vmem>>, vector<1x1x32xf32>
    %33 = vector.shape_cast %32 : vector<1x1x32xf32> to vector<1x32xf32>
    %c0_20 = arith.constant 0 : index
    %c7 = arith.constant 7 : index
    %c0_21 = arith.constant 0 : index
    %34 = vector.load %arg15[%c0_20, %c7, %c0_21] : memref<1x16x32xf32, #tpu.memory_space<vmem>>, vector<1x8x32xf32>
    %35 = vector.shape_cast %34 : vector<1x8x32xf32> to vector<8x32xf32>
    %36 = tpu.concatenate %35, %24 in 1 : vector<8x32xf32>, vector<8x32xf32> -> vector<8x64xf32>
    %cst_22 = arith.constant dense<0.000000e+00> : vector<8x32xf32>
    %37 = tpu.matmul %36, %31, %cst_22 {dimension_numbers = #tpu.dot_dimension_numbers<[1], [0], [0], [1], [0, 0, 1, 1], [], []>} : vector<8x64xf32>, vector<64x32xf32>, vector<8x32xf32> -> vector<8x32xf32>
    %38 = vector.broadcast %33 : vector<1x32xf32> to vector<8x32xf32>
    %39 = arith.addf %37, %38 : vector<8x32xf32>
    %cst_23 = arith.constant 0.000000e+00 : f32
    %40 = vector.broadcast %cst_23 : f32 to vector<8x32xf32>
    %41 = arith.subf %40, %39 : vector<8x32xf32>
    %cst_24 = arith.constant 3.000000e+01 : f32
    %42 = vector.broadcast %cst_24 : f32 to vector<8x32xf32>
    %43 = arith.minimumf %41, %42 : vector<8x32xf32>
    %44 = math.exp %43 : vector<8x32xf32>
    %cst_25 = arith.constant 1.000000e+00 : f32
    %45 = vector.broadcast %cst_25 : f32 to vector<8x32xf32>
    %46 = arith.subf %45, %44 : vector<8x32xf32>
    %47 = arith.mulf %44, %44 : vector<8x32xf32>
    %cst_26 = arith.constant 1.000000e+00 : f32
    %48 = vector.broadcast %cst_26 : f32 to vector<8x32xf32>
    %49 = arith.addf %48, %47 : vector<8x32xf32>
    %50 = arith.divf %46, %49 : vector<8x32xf32>
    %c0_27 = arith.constant 0 : index
    %c0_28 = arith.constant 0 : index
    %c0_29 = arith.constant 0 : index
    %51 = vector.load %arg6[%c0_27, %c0_28, %c0_29] : memref<2x32x32xf32, #tpu.memory_space<vmem>>, vector<1x32x32xf32>
    %52 = vector.shape_cast %51 : vector<1x32x32xf32> to vector<32x32xf32>
    %cst_30 = arith.constant dense<0.000000e+00> : vector<8x32xf32>
    %53 = tpu.matmul %50, %52, %cst_30 {dimension_numbers = #tpu.dot_dimension_numbers<[1], [0], [0], [1], [0, 0, 1, 1], [], []>} : vector<8x32xf32>, vector<32x32xf32>, vector<8x32xf32> -> vector<8x32xf32>
    %c0_31 = arith.constant 0 : index
    %c0_32 = arith.constant 0 : index
    %c0_33 = arith.constant 0 : index
    %54 = vector.load %arg7[%c0_31, %c0_32, %c0_33] : memref<2x1x32xf32, #tpu.memory_space<vmem>>, vector<1x1x32xf32>
    %55 = vector.shape_cast %54 : vector<1x1x32xf32> to vector<1x32xf32>
    %56 = vector.broadcast %55 : vector<1x32xf32> to vector<8x32xf32>
    %57 = arith.addf %53, %56 : vector<8x32xf32>
    %58 = arith.addf %24, %57 : vector<8x32xf32>
    %59 = vector.shape_cast %50 : vector<8x32xf32> to vector<1x8x32xf32>
    %60 = vector.extract_strided_slice %59 {offsets = [0, 7, 0], sizes = [1, 1, 32], strides = [1, 1, 1]} : vector<1x8x32xf32> to vector<1x1x32xf32>
    %61 = vector.shape_cast %60 : vector<1x1x32xf32> to vector<1x32xf32>
    %c0_34 = arith.constant 0 : index
    %c0_35 = arith.constant 0 : index
    %c0_36 = arith.constant 0 : index
    %62 = vector.load %arg8[%c0_34, %c0_35, %c0_36] : memref<2x32x32xf32, #tpu.memory_space<vmem>>, vector<1x32x32xf32>
    %63 = vector.shape_cast %62 : vector<1x32x32xf32> to vector<32x32xf32>
    %cst_37 = arith.constant dense<0.000000e+00> : vector<1x32xf32>
    %64 = tpu.matmul %61, %63, %cst_37 {dimension_numbers = #tpu.dot_dimension_numbers<[1], [0], [0], [1], [0, 0, 1, 1], [], []>} : vector<1x32xf32>, vector<32x32xf32>, vector<1x32xf32> -> vector<1x32xf32>
    %c0_38 = arith.constant 0 : index
    %c0_39 = arith.constant 0 : index
    %c0_40 = arith.constant 0 : index
    %65 = vector.load %arg9[%c0_38, %c0_39, %c0_40] : memref<2x1x32xf32, #tpu.memory_space<vmem>>, vector<1x1x32xf32>
    %66 = vector.shape_cast %65 : vector<1x1x32xf32> to vector<1x32xf32>
    %67 = arith.addf %64, %66 : vector<1x32xf32>
    %68 = arith.addf %27, %67 : vector<1x32xf32>
    %69 = vector.shape_cast %58 : vector<8x32xf32> to vector<1x8x32xf32>
    %c0_41 = arith.constant 0 : index
    %c8_42 = arith.constant 8 : index
    %c0_43 = arith.constant 0 : index
    %70 = vector.load %arg15[%c0_41, %c8_42, %c0_43] : memref<1x16x32xf32, #tpu.memory_space<vmem>>, vector<1x8x32xf32>
    tpu.vector_store %arg15[%c0_41, %c8_42, %c0_43], %69 {strides = array<i32>} : memref<1x16x32xf32, #tpu.memory_space<vmem>>, vector<1x8x32xf32>,
    %c1 = arith.constant 1 : index
    %c0_44 = arith.constant 0 : index
    %c0_45 = arith.constant 0 : index
    %71 = vector.load %arg4[%c1, %c0_44, %c0_45] : memref<2x64x32xf32, #tpu.memory_space<vmem>>, vector<1x64x32xf32>
    %72 = vector.shape_cast %71 : vector<1x64x32xf32> to vector<64x32xf32>
    %c1_46 = arith.constant 1 : index
    %c0_47 = arith.constant 0 : index
    %c0_48 = arith.constant 0 : index
    %73 = vector.load %arg5[%c1_46, %c0_47, %c0_48] : memref<2x1x32xf32, #tpu.memory_space<vmem>>, vector<1x1x32xf32>
    %74 = vector.shape_cast %73 : vector<1x1x32xf32> to vector<1x32xf32>
    %c0_49 = arith.constant 0 : index
    %c6 = arith.constant 6 : index
    %c0_50 = arith.constant 0 : index
    %75 = vector.load %arg15[%c0_49, %c6, %c0_50] : memref<1x16x32xf32, #tpu.memory_space<vmem>>, vector<1x8x32xf32>
    %76 = vector.shape_cast %75 : vector<1x8x32xf32> to vector<8x32xf32>
    %77 = tpu.concatenate %76, %58 in 1 : vector<8x32xf32>, vector<8x32xf32> -> vector<8x64xf32>
    %cst_51 = arith.constant dense<0.000000e+00> : vector<8x32xf32>
    %78 = tpu.matmul %77, %72, %cst_51 {dimension_numbers = #tpu.dot_dimension_numbers<[1], [0], [0], [1], [0, 0, 1, 1], [], []>} : vector<8x64xf32>, vector<64x32xf32>, vector<8x32xf32> -> vector<8x32xf32>
    %79 = vector.broadcast %74 : vector<1x32xf32> to vector<8x32xf32>
    %80 = arith.addf %78, %79 : vector<8x32xf32>
    %cst_52 = arith.constant 0.000000e+00 : f32
    %81 = vector.broadcast %cst_52 : f32 to vector<8x32xf32>
    %82 = arith.subf %81, %80 : vector<8x32xf32>
    %cst_53 = arith.constant 3.000000e+01 : f32
    %83 = vector.broadcast %cst_53 : f32 to vector<8x32xf32>
    %84 = arith.minimumf %82, %83 : vector<8x32xf32>
    %85 = math.exp %84 : vector<8x32xf32>
    %cst_54 = arith.constant 1.000000e+00 : f32
    %86 = vector.broadcast %cst_54 : f32 to vector<8x32xf32>
    %87 = arith.subf %86, %85 : vector<8x32xf32>
    %88 = arith.mulf %85, %85 : vector<8x32xf32>
    %cst_55 = arith.constant 1.000000e+00 : f32
    %89 = vector.broadcast %cst_55 : f32 to vector<8x32xf32>
    %90 = arith.addf %89, %88 : vector<8x32xf32>
    %91 = arith.divf %87, %90 : vector<8x32xf32>
    %92 = vector.shape_cast %91 : vector<8x32xf32> to vector<1x8x32xf32>
    %93 = vector.extract_strided_slice %92 {offsets = [0, 7, 0], sizes = [1, 1, 32], strides = [1, 1, 1]} : vector<1x8x32xf32> to vector<1x1x32xf32>
    %94 = vector.shape_cast %93 : vector<1x1x32xf32> to vector<1x32xf32>
    %c1_56 = arith.constant 1 : index
    %c0_57 = arith.constant 0 : index
    %c0_58 = arith.constant 0 : index
    %95 = vector.load %arg8[%c1_56, %c0_57, %c0_58] : memref<2x32x32xf32, #tpu.memory_space<vmem>>, vector<1x32x32xf32>
    %96 = vector.shape_cast %95 : vector<1x32x32xf32> to vector<32x32xf32>
    %cst_59 = arith.constant dense<0.000000e+00> : vector<1x32xf32>
    %97 = tpu.matmul %94, %96, %cst_59 {dimension_numbers = #tpu.dot_dimension_numbers<[1], [0], [0], [1], [0, 0, 1, 1], [], []>} : vector<1x32xf32>, vector<32x32xf32>, vector<1x32xf32> -> vector<1x32xf32>
    %c1_60 = arith.constant 1 : index
    %c0_61 = arith.constant 0 : index
    %c0_62 = arith.constant 0 : index
    %98 = vector.load %arg9[%c1_60, %c0_61, %c0_62] : memref<2x1x32xf32, #tpu.memory_space<vmem>>, vector<1x1x32xf32>
    %99 = vector.shape_cast %98 : vector<1x1x32xf32> to vector<1x32xf32>
    %100 = arith.addf %97, %99 : vector<1x32xf32>
    %101 = arith.addf %68, %100 : vector<1x32xf32>
    %c0_63 = arith.constant 0 : index
    %c0_64 = arith.constant 0 : index
    %102 = vector.load %arg10[%c0_63, %c0_64] : memref<32x32xf32, #tpu.memory_space<vmem>>, vector<32x32xf32>
    %cst_65 = arith.constant dense<0.000000e+00> : vector<1x32xf32>
    %103 = tpu.matmul %101, %102, %cst_65 {dimension_numbers = #tpu.dot_dimension_numbers<[1], [0], [0], [1], [0, 0, 1, 1], [], []>} : vector<1x32xf32>, vector<32x32xf32>, vector<1x32xf32> -> vector<1x32xf32>
    %c0_66 = arith.constant 0 : index
    %c0_67 = arith.constant 0 : index
    %104 = vector.load %arg11[%c0_66, %c0_67] : memref<1x32xf32, #tpu.memory_space<vmem>>, vector<1x32xf32>
    %105 = arith.addf %103, %104 : vector<1x32xf32>
    %cst_68 = arith.constant 0.000000e+00 : f32
    %106 = vector.broadcast %cst_68 : f32 to vector<1x32xf32>
    %107 = arith.maximumf %105, %106 : vector<1x32xf32>
    %c0_69 = arith.constant 0 : index
    %c0_70 = arith.constant 0 : index
    %108 = vector.load %arg12[%c0_69, %c0_70] : memref<32x1xf32, #tpu.memory_space<vmem>>, vector<32x1xf32>
    %cst_71 = arith.constant dense<0.000000e+00> : vector<1x1xf32>
    %109 = tpu.matmul %107, %108, %cst_71 {dimension_numbers = #tpu.dot_dimension_numbers<[1], [0], [0], [1], [0, 0, 1, 1], [], []>} : vector<1x32xf32>, vector<32x1xf32>, vector<1x1xf32> -> vector<1x1xf32>
    %c0_72 = arith.constant 0 : index
    %c0_73 = arith.constant 0 : index
    %110 = vector.load %arg13[%c0_72, %c0_73] : memref<1x1xf32, #tpu.memory_space<vmem>>, vector<1x1xf32>
    %111 = arith.addf %109, %110 : vector<1x1xf32>
    %112 = vector.shape_cast %111 : vector<1x1xf32> to vector<1x1x1xf32>
    %c0_74 = arith.constant 0 : index
    %c0_75 = arith.constant 0 : index
    %c0_76 = arith.constant 0 : index
    %113 = vector.load %arg14[%c0_74, %c0_75, %c0_76] : memref<1x1x1xf32, #tpu.memory_space<vmem>>, vector<1x1x1xf32>
    tpu.vector_store %arg14[%c0_74, %c0_75, %c0_76], %112 {strides = array<i32>} : memref<1x1x1xf32, #tpu.memory_space<vmem>>, vector<1x1x1xf32>,
    return
  }
  func.func @transform_0(%arg0: i32) -> (i32, i32, i32) {
    %c0_i32 = arith.constant 0 : i32
    %c0_i32_0 = arith.constant 0 : i32
    %c0_i32_1 = arith.constant 0 : i32
    return %arg0, %c0_i32, %c0_i32_0 : i32, i32, i32
  }
  func.func @transform_1(%arg0: i32) -> (i32, i32) {
    %c0_i32 = arith.constant 0 : i32
    %c0_i32_0 = arith.constant 0 : i32
    %c0_i32_1 = arith.constant 0 : i32
    return %c0_i32, %c0_i32_0 : i32, i32
  }
  func.func @transform_2(%arg0: i32) -> (i32, i32) {
    %c0_i32 = arith.constant 0 : i32
    %c0_i32_0 = arith.constant 0 : i32
    %c0_i32_1 = arith.constant 0 : i32
    return %c0_i32, %c0_i32_0 : i32, i32
  }
  func.func @transform_3(%arg0: i32) -> (i32, i32, i32) {
    %c0_i32 = arith.constant 0 : i32
    %c0_i32_0 = arith.constant 0 : i32
    %c0_i32_1 = arith.constant 0 : i32
    %c0_i32_2 = arith.constant 0 : i32
    return %c0_i32, %c0_i32_0, %c0_i32_1 : i32, i32, i32
  }
  func.func @transform_4(%arg0: i32) -> (i32, i32, i32) {
    %c0_i32 = arith.constant 0 : i32
    %c0_i32_0 = arith.constant 0 : i32
    %c0_i32_1 = arith.constant 0 : i32
    %c0_i32_2 = arith.constant 0 : i32
    return %c0_i32, %c0_i32_0, %c0_i32_1 : i32, i32, i32
  }
  func.func @transform_5(%arg0: i32) -> (i32, i32, i32) {
    %c0_i32 = arith.constant 0 : i32
    %c0_i32_0 = arith.constant 0 : i32
    %c0_i32_1 = arith.constant 0 : i32
    %c0_i32_2 = arith.constant 0 : i32
    return %c0_i32, %c0_i32_0, %c0_i32_1 : i32, i32, i32
  }
  func.func @transform_6(%arg0: i32) -> (i32, i32, i32) {
    %c0_i32 = arith.constant 0 : i32
    %c0_i32_0 = arith.constant 0 : i32
    %c0_i32_1 = arith.constant 0 : i32
    %c0_i32_2 = arith.constant 0 : i32
    return %c0_i32, %c0_i32_0, %c0_i32_1 : i32, i32, i32
  }
  func.func @transform_7(%arg0: i32) -> (i32, i32, i32) {
    %c0_i32 = arith.constant 0 : i32
    %c0_i32_0 = arith.constant 0 : i32
    %c0_i32_1 = arith.constant 0 : i32
    %c0_i32_2 = arith.constant 0 : i32
    return %c0_i32, %c0_i32_0, %c0_i32_1 : i32, i32, i32
  }
  func.func @transform_8(%arg0: i32) -> (i32, i32, i32) {
    %c0_i32 = arith.constant 0 : i32
    %c0_i32_0 = arith.constant 0 : i32
    %c0_i32_1 = arith.constant 0 : i32
    %c0_i32_2 = arith.constant 0 : i32
    return %c0_i32, %c0_i32_0, %c0_i32_1 : i32, i32, i32
  }
  func.func @transform_9(%arg0: i32) -> (i32, i32) {
    %c0_i32 = arith.constant 0 : i32
    %c0_i32_0 = arith.constant 0 : i32
    %c0_i32_1 = arith.constant 0 : i32
    return %c0_i32, %c0_i32_0 : i32, i32
  }
  func.func @transform_10(%arg0: i32) -> (i32, i32) {
    %c0_i32 = arith.constant 0 : i32
    %c0_i32_0 = arith.constant 0 : i32
    %c0_i32_1 = arith.constant 0 : i32
    return %c0_i32, %c0_i32_0 : i32, i32
  }
  func.func @transform_11(%arg0: i32) -> (i32, i32) {
    %c0_i32 = arith.constant 0 : i32
    %c0_i32_0 = arith.constant 0 : i32
    %c0_i32_1 = arith.constant 0 : i32
    return %c0_i32, %c0_i32_0 : i32, i32
  }
  func.func @transform_12(%arg0: i32) -> (i32, i32) {
    %c0_i32 = arith.constant 0 : i32
    %c0_i32_0 = arith.constant 0 : i32
    %c0_i32_1 = arith.constant 0 : i32
    return %c0_i32, %c0_i32_0 : i32, i32
  }
  func.func @transform_13(%arg0: i32) -> (i32, i32, i32) {
    %c0_i32 = arith.constant 0 : i32
    %c0_i32_0 = arith.constant 0 : i32
    %c0_i32_1 = arith.constant 0 : i32
    return %arg0, %c0_i32, %c0_i32_0 : i32, i32, i32
  }
}

module attributes {stable_mosaic.version = 11 : i64} {
  func.func @_wavenet_kernel(%arg0: i32, %arg1: memref<1x8x1xf32, #tpu.memory_space<vmem>>, %arg2: memref<2x32xf32, #tpu.memory_space<vmem>>, %arg3: memref<1x32xf32, #tpu.memory_space<vmem>>, %arg4: memref<2x64x32xf32, #tpu.memory_space<vmem>>, %arg5: memref<2x1x32xf32, #tpu.memory_space<vmem>>, %arg6: memref<2x32x32xf32, #tpu.memory_space<vmem>>, %arg7: memref<2x1x32xf32, #tpu.memory_space<vmem>>, %arg8: memref<2x32x32xf32, #tpu.memory_space<vmem>>, %arg9: memref<2x1x32xf32, #tpu.memory_space<vmem>>, %arg10: memref<32x32xf32, #tpu.memory_space<vmem>>, %arg11: memref<1x32xf32, #tpu.memory_space<vmem>>, %arg12: memref<32x1xf32, #tpu.memory_space<vmem>>, %arg13: memref<1x1xf32, #tpu.memory_space<vmem>>, %arg14: memref<1x1x1xf32, #tpu.memory_space<vmem>>, %arg15: memref<1x16x32xf32, #tpu.memory_space<vmem>>) attributes {dimension_semantics = [#tpu.dimension_semantics<parallel>], iteration_bounds = array<i64: 2>, scalar_prefetch = 0 : i64, scratch_operands = 1 : i64, tpu.core_type = #tpu.core_type<tc>, window_params = [{transform_indices = @transform_0, window_bounds = array<i64: 1, 8, 1>}, {pipeline_mode = #tpu.pipeline_mode<synchronous>, transform_indices = @transform_1, window_bounds = array<i64: 2, 32>}, {pipeline_mode = #tpu.pipeline_mode<synchronous>, transform_indices = @transform_2, window_bounds = array<i64: 1, 32>}, {pipeline_mode = #tpu.pipeline_mode<synchronous>, transform_indices = @transform_3, window_bounds = array<i64: 2, 64, 32>}, {pipeline_mode = #tpu.pipeline_mode<synchronous>, transform_indices = @transform_4, window_bounds = array<i64: 2, 1, 32>}, {pipeline_mode = #tpu.pipeline_mode<synchronous>, transform_indices = @transform_5, window_bounds = array<i64: 2, 32, 32>}, {pipeline_mode = #tpu.pipeline_mode<synchronous>, transform_indices = @transform_6, window_bounds = array<i64: 2, 1, 32>}, {pipeline_mode = #tpu.pipeline_mode<synchronous>, transform_indices = @transform_7, window_bounds = array<i64: 2, 32, 32>}, {pipeline_mode = #tpu.pipeline_mode<synchronous>, transform_indices = @transform_8, window_bounds = array<i64: 2, 1, 32>}, {pipeline_mode = #tpu.pipeline_mode<synchronous>, transform_indices = @transform_9, window_bounds = array<i64: 32, 32>}, {pipeline_mode = #tpu.pipeline_mode<synchronous>, transform_indices = @transform_10, window_bounds = array<i64: 1, 32>}, {pipeline_mode = #tpu.pipeline_mode<synchronous>, transform_indices = @transform_11, window_bounds = array<i64: 32, 1>}, {pipeline_mode = #tpu.pipeline_mode<synchronous>, transform_indices = @transform_12, window_bounds = array<i64: 1, 1>}, {transform_indices = @transform_13, window_bounds = array<i64: 1, 1, 1>}]} {
    %c0 = arith.constant 0 : index
    %c0_0 = arith.constant 0 : index
    %c0_1 = arith.constant 0 : index
    %0 = vector.load %arg1[%c0, %c0_0, %c0_1] : memref<1x8x1xf32, #tpu.memory_space<vmem>>, vector<1x8x1xf32>
    %c0_2 = arith.constant 0 : index
    %c0_3 = arith.constant 0 : index
    %1 = vector.load %arg2[%c0_2, %c0_3] : memref<2x32xf32, #tpu.memory_space<vmem>>, vector<2x32xf32>
    %cst = arith.constant 0.000000e+00 : f32
    %2 = vector.broadcast %cst : f32 to vector<1x8x32xf32>
    %c0_4 = arith.constant 0 : index
    %c0_5 = arith.constant 0 : index
    %3 = vector.load %arg3[%c0_4, %c0_5] : memref<1x32xf32, #tpu.memory_space<vmem>>, vector<1x32xf32>
    %4 = vector.shape_cast %3 : vector<1x32xf32> to vector<1x1x32xf32>
    %5 = vector.broadcast %4 : vector<1x1x32xf32> to vector<1x8x32xf32>
    %6 = arith.addf %2, %5 : vector<1x8x32xf32>
    %cst_6 = arith.constant 0.000000e+00 : f32
    %7 = vector.broadcast %cst_6 : f32 to vector<1x1x1xf32>
    %8 = vector.extract_strided_slice %0 {offsets = [0, 0, 0], sizes = [1, 7, 1], strides = [1, 1, 1]} : vector<1x8x1xf32> to vector<1x7x1xf32>
    %9 = tpu.concatenate %7, %8 in 1 : vector<1x1x1xf32>, vector<1x7x1xf32> -> vector<1x8x1xf32>
    %10 = vector.extract_strided_slice %1 {offsets = [0, 0], sizes = [1, 32], strides = [1, 1]} : vector<2x32xf32> to vector<1x32xf32>
    %11 = vector.shape_cast %10 : vector<1x32xf32> to vector<32xf32>
    %12 = vector.shape_cast %11 : vector<32xf32> to vector<1x1x32xf32>
    %13 = vector.broadcast %9 : vector<1x8x1xf32> to vector<1x8x32xf32>
    %14 = vector.broadcast %12 : vector<1x1x32xf32> to vector<1x8x32xf32>
    %15 = arith.mulf %13, %14 : vector<1x8x32xf32>
    %16 = arith.addf %6, %15 : vector<1x8x32xf32>
    %17 = vector.extract_strided_slice %1 {offsets = [1, 0], sizes = [1, 32], strides = [1, 1]} : vector<2x32xf32> to vector<1x32xf32>
    %18 = vector.shape_cast %17 : vector<1x32xf32> to vector<32xf32>
    %19 = vector.shape_cast %18 : vector<32xf32> to vector<1x1x32xf32>
    %20 = vector.broadcast %0 : vector<1x8x1xf32> to vector<1x8x32xf32>
    %21 = vector.broadcast %19 : vector<1x1x32xf32> to vector<1x8x32xf32>
    %22 = arith.mulf %20, %21 : vector<1x8x32xf32>
    %23 = arith.addf %16, %22 : vector<1x8x32xf32>
    %24 = vector.shape_cast %23 : vector<1x8x32xf32> to vector<8x32xf32>
    %cst_7 = arith.constant 0.000000e+00 : f32
    %25 = vector.broadcast %cst_7 : f32 to vector<1x8x32xf32>
    %c0_8 = arith.constant 0 : index
    %c0_9 = arith.constant 0 : index
    %c0_10 = arith.constant 0 : index
    %26 = vector.load %arg15[%c0_8, %c0_9, %c0_10] : memref<1x16x32xf32, #tpu.memory_space<vmem>>, vector<1x8x32xf32>
    tpu.vector_store %arg15[%c0_8, %c0_9, %c0_10], %25 {strides = array<i32>} : memref<1x16x32xf32, #tpu.memory_space<vmem>>, vector<1x8x32xf32>,
    %cst_11 = arith.constant 0.000000e+00 : f32
    %27 = vector.broadcast %cst_11 : f32 to vector<1x32xf32>
    %28 = vector.shape_cast %24 : vector<8x32xf32> to vector<1x8x32xf32>
    %c0_12 = arith.constant 0 : index
    %c8 = arith.constant 8 : index
    %c0_13 = arith.constant 0 : index
    %29 = vector.load %arg15[%c0_12, %c8, %c0_13] : memref<1x16x32xf32, #tpu.memory_space<vmem>>, vector<1x8x32xf32>
    tpu.vector_store %arg15[%c0_12, %c8, %c0_13], %28 {strides = array<i32>} : memref<1x16x32xf32, #tpu.memory_space<vmem>>, vector<1x8x32xf32>,
    %c0_14 = arith.constant 0 : index
    %c0_15 = arith.constant 0 : index
    %c0_16 = arith.constant 0 : index
    %30 = vector.load %arg4[%c0_14, %c0_15, %c0_16] : memref<2x64x32xf32, #tpu.memory_space<vmem>>, vector<1x64x32xf32>
    %31 = vector.shape_cast %30 : vector<1x64x32xf32> to vector<64x32xf32>
    %c0_17 = arith.constant 0 : index
    %c0_18 = arith.constant 0 : index
    %c0_19 = arith.constant 0 : index
    %32 = vector.load %arg5[%c0_17, %c0_18, %c0_19] : memref<2x1x32xf32, #tpu.memory_space<vmem>>, vector<1x1x32xf32>
    %33 = vector.shape_cast %32 : vector<1x1x32xf32> to vector<1x32xf32>
    %c0_20 = arith.constant 0 : index
    %c7 = arith.constant 7 : index
    %c0_21 = arith.constant 0 : index
    %34 = vector.load %arg15[%c0_20, %c7, %c0_21] : memref<1x16x32xf32, #tpu.memory_space<vmem>>, vector<1x8x32xf32>
    %35 = vector.shape_cast %34 : vector<1x8x32xf32> to vector<8x32xf32>
    %36 = tpu.concatenate %35, %24 in 1 : vector<8x32xf32>, vector<8x32xf32> -> vector<8x64xf32>
    %cst_22 = arith.constant dense<0.000000e+00> : vector<8x32xf32>
    %37 = tpu.matmul %36, %31, %cst_22 {dimension_numbers = #tpu.dot_dimension_numbers<[1], [0], [0], [1], [0, 0, 1, 1], [], []>} : vector<8x64xf32>, vector<64x32xf32>, vector<8x32xf32> -> vector<8x32xf32>
    %38 = vector.broadcast %33 : vector<1x32xf32> to vector<8x32xf32>
    %39 = arith.addf %37, %38 : vector<8x32xf32>
    %cst_23 = arith.constant 0.000000e+00 : f32
    %40 = vector.broadcast %cst_23 : f32 to vector<8x32xf32>
    %41 = arith.subf %40, %39 : vector<8x32xf32>
    %cst_24 = arith.constant 3.000000e+01 : f32
    %42 = vector.broadcast %cst_24 : f32 to vector<8x32xf32>
    %43 = arith.minimumf %41, %42 : vector<8x32xf32>
    %44 = math.exp %43 : vector<8x32xf32>
    %cst_25 = arith.constant 1.000000e+00 : f32
    %45 = vector.broadcast %cst_25 : f32 to vector<8x32xf32>
    %46 = arith.subf %45, %44 : vector<8x32xf32>
    %47 = arith.mulf %44, %44 : vector<8x32xf32>
    %cst_26 = arith.constant 1.000000e+00 : f32
    %48 = vector.broadcast %cst_26 : f32 to vector<8x32xf32>
    %49 = arith.addf %48, %47 : vector<8x32xf32>
    %50 = arith.divf %46, %49 : vector<8x32xf32>
    %c0_27 = arith.constant 0 : index
    %c0_28 = arith.constant 0 : index
    %c0_29 = arith.constant 0 : index
    %51 = vector.load %arg6[%c0_27, %c0_28, %c0_29] : memref<2x32x32xf32, #tpu.memory_space<vmem>>, vector<1x32x32xf32>
    %52 = vector.shape_cast %51 : vector<1x32x32xf32> to vector<32x32xf32>
    %cst_30 = arith.constant dense<0.000000e+00> : vector<8x32xf32>
    %53 = tpu.matmul %50, %52, %cst_30 {dimension_numbers = #tpu.dot_dimension_numbers<[1], [0], [0], [1], [0, 0, 1, 1], [], []>} : vector<8x32xf32>, vector<32x32xf32>, vector<8x32xf32> -> vector<8x32xf32>
    %c0_31 = arith.constant 0 : index
    %c0_32 = arith.constant 0 : index
    %c0_33 = arith.constant 0 : index
    %54 = vector.load %arg7[%c0_31, %c0_32, %c0_33] : memref<2x1x32xf32, #tpu.memory_space<vmem>>, vector<1x1x32xf32>
    %55 = vector.shape_cast %54 : vector<1x1x32xf32> to vector<1x32xf32>
    %56 = vector.broadcast %55 : vector<1x32xf32> to vector<8x32xf32>
    %57 = arith.addf %53, %56 : vector<8x32xf32>
    %58 = arith.addf %24, %57 : vector<8x32xf32>
    %59 = vector.shape_cast %50 : vector<8x32xf32> to vector<1x8x32xf32>
    %60 = vector.extract_strided_slice %59 {offsets = [0, 7, 0], sizes = [1, 1, 32], strides = [1, 1, 1]} : vector<1x8x32xf32> to vector<1x1x32xf32>
    %61 = vector.shape_cast %60 : vector<1x1x32xf32> to vector<1x32xf32>
    %c0_34 = arith.constant 0 : index
    %c0_35 = arith.constant 0 : index
    %c0_36 = arith.constant 0 : index
    %62 = vector.load %arg8[%c0_34, %c0_35, %c0_36] : memref<2x32x32xf32, #tpu.memory_space<vmem>>, vector<1x32x32xf32>
    %63 = vector.shape_cast %62 : vector<1x32x32xf32> to vector<32x32xf32>
    %cst_37 = arith.constant dense<0.000000e+00> : vector<1x32xf32>
    %64 = tpu.matmul %61, %63, %cst_37 {dimension_numbers = #tpu.dot_dimension_numbers<[1], [0], [0], [1], [0, 0, 1, 1], [], []>} : vector<1x32xf32>, vector<32x32xf32>, vector<1x32xf32> -> vector<1x32xf32>
    %c0_38 = arith.constant 0 : index
    %c0_39 = arith.constant 0 : index
    %c0_40 = arith.constant 0 : index
    %65 = vector.load %arg9[%c0_38, %c0_39, %c0_40] : memref<2x1x32xf32, #tpu.memory_space<vmem>>, vector<1x1x32xf32>
    %66 = vector.shape_cast %65 : vector<1x1x32xf32> to vector<1x32xf32>
    %67 = arith.addf %64, %66 : vector<1x32xf32>
    %68 = arith.addf %27, %67 : vector<1x32xf32>
    %69 = vector.shape_cast %58 : vector<8x32xf32> to vector<1x8x32xf32>
    %c0_41 = arith.constant 0 : index
    %c8_42 = arith.constant 8 : index
    %c0_43 = arith.constant 0 : index
    %70 = vector.load %arg15[%c0_41, %c8_42, %c0_43] : memref<1x16x32xf32, #tpu.memory_space<vmem>>, vector<1x8x32xf32>
    tpu.vector_store %arg15[%c0_41, %c8_42, %c0_43], %69 {strides = array<i32>} : memref<1x16x32xf32, #tpu.memory_space<vmem>>, vector<1x8x32xf32>,
    %c1 = arith.constant 1 : index
    %c0_44 = arith.constant 0 : index
    %c0_45 = arith.constant 0 : index
    %71 = vector.load %arg4[%c1, %c0_44, %c0_45] : memref<2x64x32xf32, #tpu.memory_space<vmem>>, vector<1x64x32xf32>
    %72 = vector.shape_cast %71 : vector<1x64x32xf32> to vector<64x32xf32>
    %c1_46 = arith.constant 1 : index
    %c0_47 = arith.constant 0 : index
    %c0_48 = arith.constant 0 : index
    %73 = vector.load %arg5[%c1_46, %c0_47, %c0_48] : memref<2x1x32xf32, #tpu.memory_space<vmem>>, vector<1x1x32xf32>
    %74 = vector.shape_cast %73 : vector<1x1x32xf32> to vector<1x32xf32>
    %c0_49 = arith.constant 0 : index
    %c6 = arith.constant 6 : index
    %c0_50 = arith.constant 0 : index
    %75 = vector.load %arg15[%c0_49, %c6, %c0_50] : memref<1x16x32xf32, #tpu.memory_space<vmem>>, vector<1x8x32xf32>
    %76 = vector.shape_cast %75 : vector<1x8x32xf32> to vector<8x32xf32>
    %77 = tpu.concatenate %76, %58 in 1 : vector<8x32xf32>, vector<8x32xf32> -> vector<8x64xf32>
    %cst_51 = arith.constant dense<0.000000e+00> : vector<8x32xf32>
    %78 = tpu.matmul %77, %72, %cst_51 {dimension_numbers = #tpu.dot_dimension_numbers<[1], [0], [0], [1], [0, 0, 1, 1], [], []>} : vector<8x64xf32>, vector<64x32xf32>, vector<8x32xf32> -> vector<8x32xf32>
    %79 = vector.broadcast %74 : vector<1x32xf32> to vector<8x32xf32>
    %80 = arith.addf %78, %79 : vector<8x32xf32>
    %cst_52 = arith.constant 0.000000e+00 : f32
    %81 = vector.broadcast %cst_52 : f32 to vector<8x32xf32>
    %82 = arith.subf %81, %80 : vector<8x32xf32>
    %cst_53 = arith.constant 3.000000e+01 : f32
    %83 = vector.broadcast %cst_53 : f32 to vector<8x32xf32>
    %84 = arith.minimumf %82, %83 : vector<8x32xf32>
    %85 = math.exp %84 : vector<8x32xf32>
    %cst_54 = arith.constant 1.000000e+00 : f32
    %86 = vector.broadcast %cst_54 : f32 to vector<8x32xf32>
    %87 = arith.subf %86, %85 : vector<8x32xf32>
    %88 = arith.mulf %85, %85 : vector<8x32xf32>
    %cst_55 = arith.constant 1.000000e+00 : f32
    %89 = vector.broadcast %cst_55 : f32 to vector<8x32xf32>
    %90 = arith.addf %89, %88 : vector<8x32xf32>
    %91 = arith.divf %87, %90 : vector<8x32xf32>
    %92 = vector.shape_cast %91 : vector<8x32xf32> to vector<1x8x32xf32>
    %93 = vector.extract_strided_slice %92 {offsets = [0, 7, 0], sizes = [1, 1, 32], strides = [1, 1, 1]} : vector<1x8x32xf32> to vector<1x1x32xf32>
    %94 = vector.shape_cast %93 : vector<1x1x32xf32> to vector<1x32xf32>
    %c1_56 = arith.constant 1 : index
    %c0_57 = arith.constant 0 : index
    %c0_58 = arith.constant 0 : index
    %95 = vector.load %arg8[%c1_56, %c0_57, %c0_58] : memref<2x32x32xf32, #tpu.memory_space<vmem>>, vector<1x32x32xf32>
    %96 = vector.shape_cast %95 : vector<1x32x32xf32> to vector<32x32xf32>
    %cst_59 = arith.constant dense<0.000000e+00> : vector<1x32xf32>
    %97 = tpu.matmul %94, %96, %cst_59 {dimension_numbers = #tpu.dot_dimension_numbers<[1], [0], [0], [1], [0, 0, 1, 1], [], []>} : vector<1x32xf32>, vector<32x32xf32>, vector<1x32xf32> -> vector<1x32xf32>
    %c1_60 = arith.constant 1 : index
    %c0_61 = arith.constant 0 : index
    %c0_62 = arith.constant 0 : index
    %98 = vector.load %arg9[%c1_60, %c0_61, %c0_62] : memref<2x1x32xf32, #tpu.memory_space<vmem>>, vector<1x1x32xf32>
    %99 = vector.shape_cast %98 : vector<1x1x32xf32> to vector<1x32xf32>
    %100 = arith.addf %97, %99 : vector<1x32xf32>
    %101 = arith.addf %68, %100 : vector<1x32xf32>
    %c0_63 = arith.constant 0 : index
    %c0_64 = arith.constant 0 : index
    %102 = vector.load %arg10[%c0_63, %c0_64] : memref<32x32xf32, #tpu.memory_space<vmem>>, vector<32x32xf32>
    %cst_65 = arith.constant dense<0.000000e+00> : vector<1x32xf32>
    %103 = tpu.matmul %101, %102, %cst_65 {dimension_numbers = #tpu.dot_dimension_numbers<[1], [0], [0], [1], [0, 0, 1, 1], [], []>} : vector<1x32xf32>, vector<32x32xf32>, vector<1x32xf32> -> vector<1x32xf32>
    %c0_66 = arith.constant 0 : index
    %c0_67 = arith.constant 0 : index
    %104 = vector.load %arg11[%c0_66, %c0_67] : memref<1x32xf32, #tpu.memory_space<vmem>>, vector<1x32xf32>
    %105 = arith.addf %103, %104 : vector<1x32xf32>
    %cst_68 = arith.constant 0.000000e+00 : f32
    %106 = vector.broadcast %cst_68 : f32 to vector<1x32xf32>
    %107 = arith.maximumf %105, %106 : vector<1x32xf32>
    %c0_69 = arith.constant 0 : index
    %c0_70 = arith.constant 0 : index
    %108 = vector.load %arg12[%c0_69, %c0_70] : memref<32x1xf32, #tpu.memory_space<vmem>>, vector<32x1xf32>
    %cst_71 = arith.constant dense<0.000000e+00> : vector<1x1xf32>
    %109 = tpu.matmul %107, %108, %cst_71 {dimension_numbers = #tpu.dot_dimension_numbers<[1], [0], [0], [1], [0, 0, 1, 1], [], []>} : vector<1x32xf32>, vector<32x1xf32>, vector<1x1xf32> -> vector<1x1xf32>
    %c0_72 = arith.constant 0 : index
    %c0_73 = arith.constant 0 : index
    %110 = vector.load %arg13[%c0_72, %c0_73] : memref<1x1xf32, #tpu.memory_space<vmem>>, vector<1x1xf32>
    %111 = arith.addf %109, %110 : vector<1x1xf32>
    %112 = vector.shape_cast %111 : vector<1x1xf32> to vector<1x1x1xf32>
    %c0_74 = arith.constant 0 : index
    %c0_75 = arith.constant 0 : index
    %c0_76 = arith.constant 0 : index
    %113 = vector.load %arg14[%c0_74, %c0_75, %c0_76] : memref<1x1x1xf32, #tpu.memory_space<vmem>>, vector<1x1x1xf32>
    tpu.vector_store %arg14[%c0_74, %c0_75, %c0_76], %112 {strides = array<i32>} : memref<1x1x1xf32, #tpu.memory_space<vmem>>, vector<1x1x1xf32>,
    return
  }
  func.func @transform_0(%arg0: i32) -> (i32, i32, i32) {
    %c0_i32 = arith.constant 0 : i32
    %c0_i32_0 = arith.constant 0 : i32
    %c0_i32_1 = arith.constant 0 : i32
    return %arg0, %c0_i32, %c0_i32_0 : i32, i32, i32
  }
  func.func @transform_1(%arg0: i32) -> (i32, i32) {
    %c0_i32 = arith.constant 0 : i32
    %c0_i32_0 = arith.constant 0 : i32
    %c0_i32_1 = arith.constant 0 : i32
    return %c0_i32, %c0_i32_0 : i32, i32
  }
  func.func @transform_2(%arg0: i32) -> (i32, i32) {
    %c0_i32 = arith.constant 0 : i32
    %c0_i32_0 = arith.constant 0 : i32
    %c0_i32_1 = arith.constant 0 : i32
    return %c0_i32, %c0_i32_0 : i32, i32
  }
  func.func @transform_3(%arg0: i32) -> (i32, i32, i32) {
    %c0_i32 = arith.constant 0 : i32
    %c0_i32_0 = arith.constant 0 : i32
    %c0_i32_1 = arith.constant 0 : i32
    %c0_i32_2 = arith.constant 0 : i32
    return %c0_i32, %c0_i32_0, %c0_i32_1 : i32, i32, i32
  }
  func.func @transform_4(%arg0: i32) -> (i32, i32, i32) {
    %c0_i32 = arith.constant 0 : i32
    %c0_i32_0 = arith.constant 0 : i32
    %c0_i32_1 = arith.constant 0 : i32
    %c0_i32_2 = arith.constant 0 : i32
    return %c0_i32, %c0_i32_0, %c0_i32_1 : i32, i32, i32
  }
  func.func @transform_5(%arg0: i32) -> (i32, i32, i32) {
    %c0_i32 = arith.constant 0 : i32
    %c0_i32_0 = arith.constant 0 : i32
    %c0_i32_1 = arith.constant 0 : i32
    %c0_i32_2 = arith.constant 0 : i32
    return %c0_i32, %c0_i32_0, %c0_i32_1 : i32, i32, i32
  }
  func.func @transform_6(%arg0: i32) -> (i32, i32, i32) {
    %c0_i32 = arith.constant 0 : i32
    %c0_i32_0 = arith.constant 0 : i32
    %c0_i32_1 = arith.constant 0 : i32
    %c0_i32_2 = arith.constant 0 : i32
    return %c0_i32, %c0_i32_0, %c0_i32_1 : i32, i32, i32
  }
  func.func @transform_7(%arg0: i32) -> (i32, i32, i32) {
    %c0_i32 = arith.constant 0 : i32
    %c0_i32_0 = arith.constant 0 : i32
    %c0_i32_1 = arith.constant 0 : i32
    %c0_i32_2 = arith.constant 0 : i32
    return %c0_i32, %c0_i32_0, %c0_i32_1 : i32, i32, i32
  }
  func.func @transform_8(%arg0: i32) -> (i32, i32, i32) {
    %c0_i32 = arith.constant 0 : i32
    %c0_i32_0 = arith.constant 0 : i32
    %c0_i32_1 = arith.constant 0 : i32
    %c0_i32_2 = arith.constant 0 : i32
    return %c0_i32, %c0_i32_0, %c0_i32_1 : i32, i32, i32
  }
  func.func @transform_9(%arg0: i32) -> (i32, i32) {
    %c0_i32 = arith.constant 0 : i32
    %c0_i32_0 = arith.constant 0 : i32
    %c0_i32_1 = arith.constant 0 : i32
    return %c0_i32, %c0_i32_0 : i32, i32
  }
  func.func @transform_10(%arg0: i32) -> (i32, i32) {
    %c0_i32 = arith.constant 0 : i32
    %c0_i32_0 = arith.constant 0 : i32
    %c0_i32_1 = arith.constant 0 : i32
    return %c0_i32, %c0_i32_0 : i32, i32
  }
  func.func @transform_11(%arg0: i32) -> (i32, i32) {
    %c0_i32 = arith.constant 0 : i32
    %c0_i32_0 = arith.constant 0 : i32
    %c0_i32_1 = arith.constant 0 : i32
    return %c0_i32, %c0_i32_0 : i32, i32
  }
  func.func @transform_12(%arg0: i32) -> (i32, i32) {
    %c0_i32 = arith.constant 0 : i32
    %c0_i32_0 = arith.constant 0 : i32
    %c0_i32_1 = arith.constant 0 : i32
    return %c0_i32, %c0_i32_0 : i32, i32
  }
  func.func @transform_13(%arg0: i32) -> (i32, i32, i32) {
    %c0_i32 = arith.constant 0 : i32
    %c0_i32_0 = arith.constant 0 : i32
    %c0_i32_1 = arith.constant 0 : i32
    return %arg0, %c0_i32, %c0_i32_0 : i32, i32, i32
  }
}

</mosaic_0001>

<bundles_post_ra>
// kernel: tpu_custom_call.1
= control target key start
LH: loop header
LB: loop body
LE: loop exit
PB: predicated region body
PF: predicated region fallthrough
CT: control target
= control target key end

     0   :  { %s1472_s27 = smov 0   ;;  %s1677_s0 = inlined_call_operand.vmem [shape: f32[2,8,1], index: 0, kind: input, shape index: {}]   ;;  %s1678_s1 = inlined_call_operand.vmem [shape: f32[2,32], index: 1, kind: input, shape index: {}]   ;;  %s1679_s2 = inlined_call_operand.vmem [shape: f32[1,32], index: 2, kind: input, shape index: {}]   ;;  %s1680_s3 = inlined_call_operand.vmem [shape: f32[2,64,32], index: 3, kind: input, shape index: {}]   ;;  %s1681_s4 = inlined_call_operand.vmem [shape: f32[2,1,32], index: 4, kind: input, shape index: {}]   ;;  %s1682_s5 = inlined_call_operand.vmem [shape: f32[2,32,32], index: 5, kind: input, shape index: {}]   ;;  %s1683_s6 = inlined_call_operand.vmem [shape: f32[2,1,32], index: 6, kind: input, shape index: {}]   ;;  %s1684_s7 = inlined_call_operand.vmem [shape: f32[2,32,32], index: 7, kind: input, shape index: {}]   ;;  %s1685_s8 = inlined_call_operand.vmem [shape: f32[2,1,32], index: 8, kind: input, shape index: {}]   ;;  %s1686_s9 = inlined_call_operand.vmem [shape: f32[32,32], index: 9, kind: input, shape index: {}]   ;;  %s1687_s10 = inlined_call_operand.vmem [shape: f32[1,32], index: 10, kind: input, shape index: {}]   ;;  %s1688_s11 = inlined_call_operand.vmem [shape: f32[32,1], index: 11, kind: input, shape index: {}]   ;;  %s1689_s12 = inlined_call_operand.<no memory space> [shape: f32[1,1], index: 12, kind: input, shape index: {}]   ;;  %s1690_s13 = inlined_call_operand.vmem [shape: f32[2,1,1], index: 13, kind: output, shape index: {}]  }
   0x1   :  { %v18_v0 = vstv %s1689_s12 }
   0x2   :  { %19 = vst [vmem:[#allocation3] sm:$0x1] %v18_v0 }
   0x3 LB: > { %s1137_s28 = sadd.s32 4294967295, %s1392_s27   ;;  %p1141_p0 = scmp.ge.s32.totalorder %s1392_s27, 1  ;;  %s1392_s27 = sphi %s1472_s27, %s25_s27  }
   0x4   : > { %p388_p1 = scmp.lt.s32.totalorder %s1392_s27, 3 }
   0x6   : > { %p389_p2 = pnand %p1141_p0, %p388_p1 }
   0x7   : > { %p429_p3 = scmp.lt.s32.totalorder (!%p389_p2), %s1137_s28, 1  ;;  %v1394_v1 = vmov (!%p389_p2), 0   ;;  %vm449_vm0 = vcmask (!%p389_p2), 1040384   ;;  %vm472_vm1 = vcmask (!%p389_p2), 261120   ;;  %v475_v5 = vld [vmem:[%s1680_s3] sm:$0xff] (!%p389_p2)  ;;  %v476_v6 = vld [vmem:[%s1680_s3 + $0x8] sm:$0xff] (!%p389_p2)  ;;  %v456_v19 = vlaneseq (!%p389_p2) }
   0x8   : > { %392 = sbr.rel (%p389_p2) target bundleno = 1749 (0x6d5), region = 72  ;;  %1377 = vset.pattern.permute.xlu0 (!%p389_p2), %v1394_v1  ;;  %v477_v7 = vld [vmem:[%s1680_s3 + $0x10] sm:$0xff] (!%p389_p2)  ;;  %v1395_v8 = vmov (!%p389_p2), 0.0   ;;  %v1396_v9 = vmov (!%p389_p2), 0.0|0.0   ;;  %v1307_v10 = vpack.c.bf16 (!%p389_p2), %v476_v6, %v475_v5  ;;  %v478_v11 = vld [vmem:[%s1680_s3 + $0x18] sm:$0xff] (!%p389_p2)  ;;  %v479_v13 = vld [vmem:[%s1680_s3 + $0x20] sm:$0xff] (!%p389_p2) }
   0x9   : > { %473 = vst.msk [vmem:[#allocation2] sm:$0xff] (!%p389_p2), %vm472_vm1, %v1395_v8  ;;  %1306 = vmatprep.subr.bf16.mxu0 (!%p389_p2), %v1396_v9  ;;  %1318 = vmatprep.subr.bf16.mxu1 (!%p389_p2), %v1396_v9  ;;  %v1310_v12 = vpack.c.bf16 (!%p389_p2), %v478_v11, %v477_v7  ;;  %v480_v14 = vld [vmem:[%s1680_s3 + $0x28] sm:$0xff] (!%p389_p2)  ;;  %v481_v16 = vld [vmem:[%s1680_s3 + $0x30] sm:$0xff] (!%p389_p2)  ;;  %v482_v17 = vld [vmem:[%s1680_s3 + $0x38] sm:$0xff] (!%p389_p2)  ;;  %v457_v20 = vshrl.u32 (!%p389_p2), %v456_v19, 7  ;;  %vm1397_vm2 = vmmov (!%p389_p2), 0  }
   0xa   : > { %1308 = vmatpush3.bf16.msra.mxu0 (!%p389_p2), %v1307_v10  ;;  %v1313_v15 = vpack.c.bf16 (!%p389_p2), %v480_v14, %v479_v13  ;;  %v1316_v18 = vpack.c.bf16 (!%p389_p2), %v482_v17, %v481_v16  ;;  %v437_v22 = vld [vmem:[%s1678_s1] sm:$0x3] (!%p389_p2)  ;;  %1229 = vmatprep.mubr.msk.f32.mxu0 (!%p389_p2), %vm1397_vm2, %v1395_v8  ;;  %s1398_s19 = smov (!%p389_p2), 32   ;;  %vm496_vm3 = vcmask (!%p389_p2), 523264   ;;  %v580_v37 = vld [vmem:[%s1682_s5 + $0x8] sm:$0xff] (!%p389_p2)  ;;  %v581_v38 = vld [vmem:[%s1682_s5 + $0x10] sm:$0xff] (!%p389_p2) }
   0xb   : > { %1309 = vmatprep.subr.bf16.mxu0 (!%p389_p2), %v1396_v9  ;;  %v458_v21 = vsub.s32 (!%p389_p2), 0, %v457_v20  ;;  %1240 = vmatprep.mubr.msk.f32.mxu1 (!%p389_p2), %vm1397_vm2, %v1395_v8  ;;  %v468_v24 = vsub.s32 (!%p389_p2), 1, %v457_v20  ;;  %v1143_v28 = vld [vmem:[%s1679_s2] ss:$0 sm:$0xff] (!%p389_p2)  ;;  %v582_v40 = vld [vmem:[%s1682_s5 + $0x18] sm:$0xff] (!%p389_p2)  ;;  %v665_v53 = vld [vmem:[%s1684_s7 + $0x8] sm:$0xff] (!%p389_p2) }
   0xc   : > { %v579_v36 = vld [vmem:[%s1682_s5] sm:$0xff] (!%p389_p2)  ;;  %v1322_v41 = vpack.c.bf16 (!%p389_p2), %v582_v40, %v581_v38  ;;  %v666_v58 = vld [vmem:[%s1684_s7 + $0x10] sm:$0xff] (!%p389_p2)  ;;  %v667_v59 = vld [vmem:[%s1684_s7 + $0x18] sm:$0xff] (!%p389_p2)  ;;  %vm1088_vm4 = vcmask (!%p389_p2), 0  }
   0xd   : > { %v459_v23 = vrot.slane (!%p389_p2), %v437_v22, %v458_v21  ;;  %v469_v27 = vrot.slane (!%p389_p2), %v437_v22, %v468_v24  ;;  %v1319_v39 = vpack.c.bf16 (!%p389_p2), %v580_v37, %v579_v36  ;;  %v1144_v42 = vld [vmem:[%s1681_s4] ss:$0 sm:$0xff] (!%p389_p2)  ;;  %v1328_v60 = vpack.c.bf16 (!%p389_p2), %v667_v59, %v666_v58  ;;  %v1150_v63 = vld [vmem:[%s1680_s3 + $0x48] sm:$0xff] (!%p389_p2)  ;;  %v1151_v0 = vld [vmem:[%s1680_s3 + $0x50] sm:$0xff] (!%p389_p2) }
   0xe   : > { %1311 = vmatpush3.bf16.msra.mxu0 (!%p389_p2), %v1310_v12  ;;  %v664_v52 = vld [vmem:[%s1684_s7] sm:$0xff] (!%p389_p2)  ;;  %v1154_v5 = vld [vmem:[%s1680_s3 + $0x68] sm:$0xff] (!%p389_p2)  ;;  %v1155_v7 = vld [vmem:[%s1680_s3 + $0x70] sm:$0xff] (!%p389_p2) }
   0xf   : > { %s1692_s28 = smov (!%p429_p3, %s1137_s28), 1  ;;  %1312 = vmatprep.subr.bf16.mxu0 %v1396_v9  ;;  %1320 = vmatpush3.bf16.msra.mxu1 %v1319_v39  ;;  %v1325_v56 = vpack.c.bf16 %v665_v53, %v664_v52  ;;  %v1149_v62 = vld [vmem:[%s1680_s3 + $0x40] sm:$0xff]  ;;  %v1156_v10 = vld [vmem:[%s1680_s3 + $0x78] sm:$0xff]  ;;  %v1161_v21 = vld [vmem:[%s1684_s7 + $0x28] sm:$0xff] }
  0x10   : > { %s1142_s12 = sshll.u32 %s1692_s28, 3  ;;  %1321 = vmatprep.subr.bf16.mxu1 %v1396_v9  ;;  %v1331_v1 = vpack.c.bf16 %v1150_v63, %v1149_v62  ;;  %v1340_v11 = vpack.c.bf16 %v1156_v10, %v1155_v7  ;;  %v1146_v12 = vld [vmem:[%s1683_s6] ss:$0 sm:$0xff]  ;;  %v1162_v22 = vld [vmem:[%s1684_s7 + $0x30] sm:$0xff]  ;;  %v1163_v24 = vld [vmem:[%s1684_s7 + $0x38] sm:$0xff]  ;;  %s435_s29 = scalar_lea.vmem %s1690_s13, %s1692_s28 }
  0x11   : > { %s432_s14 = scalar_lea.vmem %s1677_s0, %s1142_s12  ;;  %v1160_v20 = vld [vmem:[%s1684_s7 + $0x20] sm:$0xff]  ;;  %v932_v38 = vld [vmem:[%s1686_s9 + $0x8] sm:$0xff] }
  0x12   : > { %v436_v2 = vld [vmem:[%s432_s14] sm:$0xff]  ;;  %1314 = vmatpush3.bf16.msra.mxu0 %v1313_v15 }
  0x13   : > { %v447_v3 = vrot.slane %v436_v2, 7  ;;  %1315 = vmatprep.subr.bf16.mxu0 %v1396_v9  ;;  %1323 = vmatpush3.bf16.msra.mxu1 %v1322_v41  ;;  %v931_v37 = vld [vmem:[%s1686_s9] sm:$0xff] }
  0x14   : > { %1324 = vmatprep.subr.bf16.mxu1 %v1396_v9  ;;  %v1349_v41 = vpack.c.bf16 %v932_v38, %v931_v37 }
  0x15   : > { %v450_v4 = vsel %vm449_vm0, 0.0, %v447_v3 }
  0x16   : > { %453 = vperm.xlu0 %1377, %v450_v4   ;;  %1317 = vmatpush3.bf16.msra.mxu0 %v1316_v18  ;;  %v1153_v4 = vld [vmem:[%s1680_s3 + $0x60] sm:$0xff] }
  0x17   : > { %1330 = vmatprep.subr.bf16.mxu0 %v1396_v9  ;;  %v1337_v6 = vpack.c.bf16 %v1154_v5, %v1153_v4 }
  0x1a   : > { %463 = vperm.xlu0 %1377, %v436_v2   ;;  %v1152_v2 = vld [vmem:[%s1680_s3 + $0x58] sm:$0xff] }
  0x1b   : > { %v1334_v3 = vpack.c.bf16 %v1152_v2, %v1151_v0 }
  0x95   : > { %v454_v25 = vpop.permute.xlu0 %453 }
  0x96   : > { %v460_v26 = vmul.f32 %v459_v23, %v454_v25  ;;  %v1343_v23 = vpack.c.bf16 %v1161_v21, %v1160_v20  ;;  %v1346_v25 = vpack.c.bf16 %v1163_v24, %v1162_v22 }
  0x98   : > { %v461_v30 = vadd.f32 %v1143_v28, %v460_v26  ;;  %v1158_v26 = vld [vmem:[%s1681_s4 + $0x1] ss:$0 sm:$0xff] }
  0x99   : > { %v464_v29 = vpop.permute.xlu0 %463 }
  0x9a   : > { %v470_v31 = vmul.f32 %v469_v27, %v464_v29 }
  0x9c   : > { %v1528_v32 = vadd.f32 %v470_v31, %v461_v30 }
  0x9e   : > { %474 = vst.msk [vmem:[#allocation2 + $0x8] sm:$0xff] %vm472_vm1, %v1528_v32  ;;  %486 = vrot.lane.b32.xlu1 %v1528_v32, %s1398_s19 }
  0xa5   : > { %v484_v34 = vld [vmem:[#allocation2 + $0x7] sm:$0xff] }
 0x110   : > { %v487_v33 = vpop.permute.xlu1 %486 }
 0x111   : > { %v489_v35 = vsel %vm472_vm1, %v484_v34, %v487_v33 }
 0x112   : > { %1230 = vmatmul.mubr.msk.f32.vlgmr.msra.gmra.mrb[0].mxu0 %vm496_vm3, %v489_v35 }
 0x113   : > { %1270 = vmatprep.mubr.msk.f32.mxu0 %vm1397_vm2, %v1395_v8  ;;  %1332 = vmatpush3.bf16.msra.mxu0 %v1331_v1 }
 0x114   : > { %1333 = vmatprep.subr.bf16.mxu0 %v1396_v9 }
 0x117   : > { %1335 = vmatpush3.bf16.msra.mxu0 %v1334_v3 }
 0x118   : > { %1336 = vmatprep.subr.bf16.mxu0 %v1396_v9 }
 0x11b   : > { %1338 = vmatpush3.bf16.msra.mxu0 %v1337_v6 }
 0x11c   : > { %1339 = vmatprep.subr.bf16.mxu0 %v1396_v9 }
 0x11f   : > { %1341 = vmatpush3.bf16.msra.mxu0 %v1340_v11 }
 0x120   : > { %1354 = vmatprep.subr.bf16.mxu0 %v1396_v9 }
 0x1e5   : > { %v566_v43 = vpop.f32.mrb[0].mxu0 }
 0x1e6   : > { %v567_v44 = vadd.f32 %v1144_v42, %v566_v43  ;;  %v1231_v45 = vpop.f32.mrb[1].mxu0  ;;  %v933_v43 = vld [vmem:[%s1686_s9 + $0x10] sm:$0xff] }
 0x1e8   : > { %v570_v46 = vsub.f32 0.0, %v567_v44  ;;  %v934_v44 = vld [vmem:[%s1686_s9 + $0x18] sm:$0xff] }
 0x1e9   : > { %v1352_v45 = vpack.c.bf16 %v934_v44, %v933_v43 }
 0x1ea   : > { %v571_v47 = vmin.f32 %v570_v46, 30.0  ;;  %v1010_v46 = vld [vmem:[%s1688_s11] sm:$0xff] }
 0x1ec   : > { %v572_v48 = vmul.f32 1.442695, %v571_v47 }
 0x1ee   : > { %1378 = vpow2.f32 %v572_v48  ;;  %v668_v48 = vld [vmem:[%s1685_s8] sm:$0x1] }
 0x1f8   : > { %v1379_v49 = vpop.eup %1378 }
 0x1f9   : > { %v575_v50 = vmul.f32 %v1379_v49, %v1379_v49  ;;  %v574_v54 = vsub.f32 1.0, %v1379_v49  ;;  %v1164_v49 = vld [vmem:[%s1685_s8 + $0x1] sm:$0x1] }
 0x1fb   : > { %v576_v51 = vadd.f32 1.0, %v575_v50  ;;  %v1360_v50 = vadd.f32 %v1164_v49, %v668_v48 }
 0x1fd   : > { %1380 = vrcp.f32 %v576_v51 }
 0x207   : > { %v1381_v55 = vpop.eup %1380 }
 0x208   : > { %v578_v57 = vmul.f32 %v1381_v55, %v574_v54  ;;  %v1012_v54 = vld [vmem:[%s1688_s11 + $0x10] sm:$0xff] }
 0x20a   : > { %1241 = vmatmul.mubr.msk.f32.vlgmr.msra.gmra.mrb[0].mxu1 %vm472_vm1, %v578_v57  ;;  %v669_v61 = vrot.slane %v578_v57, 7 }
 0x20b   : > { %1326 = vmatpush3.bf16.msra.mxu1 %v1325_v56  ;;  %1251 = vmatprep.mubr.msk.f32.mxu1 %vm1397_vm2, %v1395_v8  ;;  %v935_v56 = vld [vmem:[%s1687_s10] sm:$0x1] }
 0x20c   : > { %1327 = vmatprep.subr.bf16.mxu1 %v1396_v9 }
 0x20f   : > { %1329 = vmatpush3.bf16.msra.mxu1 %v1328_v60 }
 0x210   : > { %1342 = vmatprep.subr.bf16.mxu1 %v1396_v9 }
 0x212   : > { %1252 = vmatmul.mubr.msk.f32.vlgmr.msra.gmra.mrb[2].mxu1 %vm472_vm1, %v669_v61  ;;  %v1014_v61 = vld [vmem:[#allocation3] sm:$0x1] }
 0x213   : > { %1281 = vmatprep.mubr.msk.f32.mxu1 %vm1397_vm2, %v1395_v8  ;;  %1344 = vmatpush3.bf16.msra.mxu1 %v1343_v23 }
 0x214   : > { %1345 = vmatprep.subr.bf16.mxu1 %v1396_v9 }
 0x217   : > { %1347 = vmatpush3.bf16.msra.mxu1 %v1346_v25 }
 0x218   : > { %1348 = vmatprep.subr.bf16.mxu1 %v1396_v9 }
 0x2dd   : > { %v659_v13 = vpop.f32.mrb[0].mxu1 }
 0x2de   : > { %v660_v14 = vadd.f32 %v1146_v12, %v659_v13  ;;  %v1242_v15 = vpop.f32.mrb[1].mxu1 }
 0x2e0   : > { %v663_v16 = vadd.f32 %v660_v14, %v1528_v32 }
 0x2e2   : > { %743 = vst.msk [vmem:[#allocation2 + $0x8] sm:$0xff] %vm472_vm1, %v663_v16  ;;  %757 = vrot.lane.b32.xlu1 %v663_v16, %s1398_s19 }
 0x2e9   : > { %v755_v18 = vld [vmem:[#allocation2 + $0x6] sm:$0xff] }
 0x354   : > { %v758_v17 = vpop.permute.xlu1 %757 }
 0x355   : > { %v760_v19 = vsel %vm472_vm1, %v755_v18, %v758_v17 }
 0x356   : > { %1271 = vmatmul.mubr.msk.f32.vlgmr.msra.gmra.mrb[2].mxu0 %vm496_vm3, %v760_v19 }
 0x357   : > { %1303 = vmatprep.mubr.msk.f32.mxu0 %vm1397_vm2, %v1395_v8 }
 0x429   : > { %v836_v27 = vpop.f32.mrb[2].mxu0 }
 0x42a   : > { %v837_v28 = vadd.f32 %v1158_v26, %v836_v27  ;;  %v1272_v29 = vpop.f32.mrb[3].mxu0 }
 0x42c   : > { %v840_v30 = vsub.f32 0.0, %v837_v28 }
 0x42e   : > { %v841_v31 = vmin.f32 %v840_v30, 30.0 }
 0x430   : > { %v842_v32 = vmul.f32 1.442695, %v841_v31 }
 0x432   : > { %1382 = vpow2.f32 %v842_v32 }
 0x43c   : > { %v1383_v33 = vpop.eup %1382 }
 0x43d   : > { %v845_v34 = vmul.f32 %v1383_v33, %v1383_v33  ;;  %v844_v36 = vsub.f32 1.0, %v1383_v33 }
 0x43f   : > { %v846_v35 = vadd.f32 1.0, %v845_v34 }
 0x441   : > { %1384 = vrcp.f32 %v846_v35 }
 0x44b   : > { %v1385_v39 = vpop.eup %1384 }
 0x44c   : > { %v848_v40 = vmul.f32 %v1385_v39, %v844_v36 }
 0x44e   : > { %v857_v42 = vrot.slane %v848_v40, 7 }
 0x450   : > { %1282 = vmatmul.mubr.msk.f32.vlgmr.msra.gmra.mrb[2].mxu1 %vm472_vm1, %v857_v42 }
 0x451   : > { %1350 = vmatpush3.bf16.msra.mxu1 %v1349_v41  ;;  %1292 = vmatprep.mubr.msk.f32.mxu1 %vm1397_vm2, %v1395_v8  ;;  %v1011_v8 = vld [vmem:[%s1688_s11 + $0x8] sm:$0xff] }
 0x452   : > { %1351 = vmatprep.subr.bf16.mxu1 %v1396_v9  ;;  %v1355_v47 = vpack.c.bf16 %v1011_v8, %v1010_v46 }
 0x454   : > { %1356 = vmatpush3.bf16.msra.mxu0 %v1355_v47 }
 0x455   : > { %1353 = vmatpush3.bf16.msra.mxu1 %v1352_v45  ;;  %1357 = vmatprep.subr.bf16.mxu0 %v1396_v9  ;;  %v1013_v9 = vld [vmem:[%s1688_s11 + $0x18] sm:$0xff] }
 0x456   : > { %v1358_v55 = vpack.c.bf16 %v1013_v9, %v1012_v54 }
 0x458   : > { %1359 = vmatpush3.bf16.msra.mxu0 %v1358_v55 }
 0x523   : > { %v926_v51 = vpop.f32.mrb[2].mxu1 }
 0x524   : > { %v1361_v52 = vadd.f32 %v1360_v50, %v926_v51  ;;  %v1283_v53 = vpop.f32.mrb[3].mxu1 }
 0x526   : > { %1293 = vmatmul.mubr.msk.f32.vlgmr.msra.gmra.mrb[4].mxu1 %vm472_vm1, %v1361_v52 }
 0x5f9   : > { %v1005_v57 = vpop.f32.mrb[4].mxu1 }
 0x5fa   : > { %v1006_v58 = vadd.f32 %v1005_v57, %v935_v56  ;;  %v1294_v59 = vpop.f32.mrb[5].mxu1 }
 0x5fc   : > { %v1009_v60 = vmax.f32 %v1006_v58, 0.0 }
 0x5fe   : > { %1304 = vmatmul.mubr.msk.f32.vlgmr.msra.gmra.mrb[4].mxu0 %vm472_vm1, %v1009_v60 }
 0x6d1   : > { %v1084_v62 = vpop.f32.mrb[4].mxu0 }
 0x6d2   : > { %v1085_v63 = vadd.f32 %v1084_v62, %v1014_v61  ;;  %v1305_v0 = vpop.f32.mrb[5].mxu0 }
 0x6d4   : > { %1089 = vst.msk [vmem:[%s435_s29] sm:$0x1] %vm1088_vm4, %v1085_v63 }
 0x6d5 PF: > { %s25_s27 = sadd.s32 1, %s1392_s27  }
 0x6d6   : > { %p22_p4 = scmp.ge.s32.totalorder %s25_s27, 4  }
 0x6d8   :  { %24 = sbr.rel (!%p22_p4) target bundleno = 3 (0x3), region = 106 }

// kernel: tpu_custom_call.1
= control target key start
LH: loop header
LB: loop body
LE: loop exit
PB: predicated region body
PF: predicated region fallthrough
CT: control target
= control target key end

     0   :  { %s1472_s27 = smov 0   ;;  %s1677_s0 = inlined_call_operand.vmem [shape: f32[2,8,1], index: 0, kind: input, shape index: {}]   ;;  %s1678_s1 = inlined_call_operand.vmem [shape: f32[2,32], index: 1, kind: input, shape index: {}]   ;;  %s1679_s2 = inlined_call_operand.vmem [shape: f32[1,32], index: 2, kind: input, shape index: {}]   ;;  %s1680_s3 = inlined_call_operand.vmem [shape: f32[2,64,32], index: 3, kind: input, shape index: {}]   ;;  %s1681_s4 = inlined_call_operand.vmem [shape: f32[2,1,32], index: 4, kind: input, shape index: {}]   ;;  %s1682_s5 = inlined_call_operand.vmem [shape: f32[2,32,32], index: 5, kind: input, shape index: {}]   ;;  %s1683_s6 = inlined_call_operand.vmem [shape: f32[2,1,32], index: 6, kind: input, shape index: {}]   ;;  %s1684_s7 = inlined_call_operand.vmem [shape: f32[2,32,32], index: 7, kind: input, shape index: {}]   ;;  %s1685_s8 = inlined_call_operand.vmem [shape: f32[2,1,32], index: 8, kind: input, shape index: {}]   ;;  %s1686_s9 = inlined_call_operand.vmem [shape: f32[32,32], index: 9, kind: input, shape index: {}]   ;;  %s1687_s10 = inlined_call_operand.vmem [shape: f32[1,32], index: 10, kind: input, shape index: {}]   ;;  %s1688_s11 = inlined_call_operand.vmem [shape: f32[32,1], index: 11, kind: input, shape index: {}]   ;;  %s1689_s12 = inlined_call_operand.<no memory space> [shape: f32[1,1], index: 12, kind: input, shape index: {}]   ;;  %s1690_s13 = inlined_call_operand.vmem [shape: f32[2,1,1], index: 13, kind: output, shape index: {}]  }
   0x1   :  { %v18_v0 = vstv %s1689_s12 }
   0x2   :  { %19 = vst [vmem:[#allocation3] sm:$0x1] %v18_v0 }
   0x3 LB: > { %s1137_s28 = sadd.s32 4294967295, %s1392_s27   ;;  %p1141_p0 = scmp.ge.s32.totalorder %s1392_s27, 1  ;;  %s1392_s27 = sphi %s1472_s27, %s25_s27  }
   0x4   : > { %p388_p1 = scmp.lt.s32.totalorder %s1392_s27, 3 }
   0x6   : > { %p389_p2 = pnand %p1141_p0, %p388_p1 }
   0x7   : > { %p429_p3 = scmp.lt.s32.totalorder (!%p389_p2), %s1137_s28, 1  ;;  %v1394_v1 = vmov (!%p389_p2), 0   ;;  %vm449_vm0 = vcmask (!%p389_p2), 1040384   ;;  %vm472_vm1 = vcmask (!%p389_p2), 261120   ;;  %v475_v5 = vld [vmem:[%s1680_s3] sm:$0xff] (!%p389_p2)  ;;  %v476_v6 = vld [vmem:[%s1680_s3 + $0x8] sm:$0xff] (!%p389_p2)  ;;  %v456_v19 = vlaneseq (!%p389_p2) }
   0x8   : > { %392 = sbr.rel (%p389_p2) target bundleno = 1749 (0x6d5), region = 72  ;;  %1377 = vset.pattern.permute.xlu0 (!%p389_p2), %v1394_v1  ;;  %v477_v7 = vld [vmem:[%s1680_s3 + $0x10] sm:$0xff] (!%p389_p2)  ;;  %v1395_v8 = vmov (!%p389_p2), 0.0   ;;  %v1396_v9 = vmov (!%p389_p2), 0.0|0.0   ;;  %v1307_v10 = vpack.c.bf16 (!%p389_p2), %v476_v6, %v475_v5  ;;  %v478_v11 = vld [vmem:[%s1680_s3 + $0x18] sm:$0xff] (!%p389_p2)  ;;  %v479_v13 = vld [vmem:[%s1680_s3 + $0x20] sm:$0xff] (!%p389_p2) }
   0x9   : > { %473 = vst.msk [vmem:[#allocation2] sm:$0xff] (!%p389_p2), %vm472_vm1, %v1395_v8  ;;  %1306 = vmatprep.subr.bf16.mxu0 (!%p389_p2), %v1396_v9  ;;  %1318 = vmatprep.subr.bf16.mxu1 (!%p389_p2), %v1396_v9  ;;  %v1310_v12 = vpack.c.bf16 (!%p389_p2), %v478_v11, %v477_v7  ;;  %v480_v14 = vld [vmem:[%s1680_s3 + $0x28] sm:$0xff] (!%p389_p2)  ;;  %v481_v16 = vld [vmem:[%s1680_s3 + $0x30] sm:$0xff] (!%p389_p2)  ;;  %v482_v17 = vld [vmem:[%s1680_s3 + $0x38] sm:$0xff] (!%p389_p2)  ;;  %v457_v20 = vshrl.u32 (!%p389_p2), %v456_v19, 7  ;;  %vm1397_vm2 = vmmov (!%p389_p2), 0  }
   0xa   : > { %1308 = vmatpush3.bf16.msra.mxu0 (!%p389_p2), %v1307_v10  ;;  %v1313_v15 = vpack.c.bf16 (!%p389_p2), %v480_v14, %v479_v13  ;;  %v1316_v18 = vpack.c.bf16 (!%p389_p2), %v482_v17, %v481_v16  ;;  %v437_v22 = vld [vmem:[%s1678_s1] sm:$0x3] (!%p389_p2)  ;;  %1229 = vmatprep.mubr.msk.f32.mxu0 (!%p389_p2), %vm1397_vm2, %v1395_v8  ;;  %s1398_s19 = smov (!%p389_p2), 32   ;;  %vm496_vm3 = vcmask (!%p389_p2), 523264   ;;  %v580_v37 = vld [vmem:[%s1682_s5 + $0x8] sm:$0xff] (!%p389_p2)  ;;  %v581_v38 = vld [vmem:[%s1682_s5 + $0x10] sm:$0xff] (!%p389_p2) }
   0xb   : > { %1309 = vmatprep.subr.bf16.mxu0 (!%p389_p2), %v1396_v9  ;;  %v458_v21 = vsub.s32 (!%p389_p2), 0, %v457_v20  ;;  %1240 = vmatprep.mubr.msk.f32.mxu1 (!%p389_p2), %vm1397_vm2, %v1395_v8  ;;  %v468_v24 = vsub.s32 (!%p389_p2), 1, %v457_v20  ;;  %v1143_v28 = vld [vmem:[%s1679_s2] ss:$0 sm:$0xff] (!%p389_p2)  ;;  %v582_v40 = vld [vmem:[%s1682_s5 + $0x18] sm:$0xff] (!%p389_p2)  ;;  %v665_v53 = vld [vmem:[%s1684_s7 + $0x8] sm:$0xff] (!%p389_p2) }
   0xc   : > { %v579_v36 = vld [vmem:[%s1682_s5] sm:$0xff] (!%p389_p2)  ;;  %v1322_v41 = vpack.c.bf16 (!%p389_p2), %v582_v40, %v581_v38  ;;  %v666_v58 = vld [vmem:[%s1684_s7 + $0x10] sm:$0xff] (!%p389_p2)  ;;  %v667_v59 = vld [vmem:[%s1684_s7 + $0x18] sm:$0xff] (!%p389_p2)  ;;  %vm1088_vm4 = vcmask (!%p389_p2), 0  }
   0xd   : > { %v459_v23 = vrot.slane (!%p389_p2), %v437_v22, %v458_v21  ;;  %v469_v27 = vrot.slane (!%p389_p2), %v437_v22, %v468_v24  ;;  %v1319_v39 = vpack.c.bf16 (!%p389_p2), %v580_v37, %v579_v36  ;;  %v1144_v42 = vld [vmem:[%s1681_s4] ss:$0 sm:$0xff] (!%p389_p2)  ;;  %v1328_v60 = vpack.c.bf16 (!%p389_p2), %v667_v59, %v666_v58  ;;  %v1150_v63 = vld [vmem:[%s1680_s3 + $0x48] sm:$0xff] (!%p389_p2)  ;;  %v1151_v0 = vld [vmem:[%s1680_s3 + $0x50] sm:$0xff] (!%p389_p2) }
   0xe   : > { %1311 = vmatpush3.bf16.msra.mxu0 (!%p389_p2), %v1310_v12  ;;  %v664_v52 = vld [vmem:[%s1684_s7] sm:$0xff] (!%p389_p2)  ;;  %v1154_v5 = vld [vmem:[%s1680_s3 + $0x68] sm:$0xff] (!%p389_p2)  ;;  %v1155_v7 = vld [vmem:[%s1680_s3 + $0x70] sm:$0xff] (!%p389_p2) }
   0xf   : > { %s1692_s28 = smov (!%p429_p3, %s1137_s28), 1  ;;  %1312 = vmatprep.subr.bf16.mxu0 %v1396_v9  ;;  %1320 = vmatpush3.bf16.msra.mxu1 %v1319_v39  ;;  %v1325_v56 = vpack.c.bf16 %v665_v53, %v664_v52  ;;  %v1149_v62 = vld [vmem:[%s1680_s3 + $0x40] sm:$0xff]  ;;  %v1156_v10 = vld [vmem:[%s1680_s3 + $0x78] sm:$0xff]  ;;  %v1161_v21 = vld [vmem:[%s1684_s7 + $0x28] sm:$0xff] }
  0x10   : > { %s1142_s12 = sshll.u32 %s1692_s28, 3  ;;  %1321 = vmatprep.subr.bf16.mxu1 %v1396_v9  ;;  %v1331_v1 = vpack.c.bf16 %v1150_v63, %v1149_v62  ;;  %v1340_v11 = vpack.c.bf16 %v1156_v10, %v1155_v7  ;;  %v1146_v12 = vld [vmem:[%s1683_s6] ss:$0 sm:$0xff]  ;;  %v1162_v22 = vld [vmem:[%s1684_s7 + $0x30] sm:$0xff]  ;;  %v1163_v24 = vld [vmem:[%s1684_s7 + $0x38] sm:$0xff]  ;;  %s435_s29 = scalar_lea.vmem %s1690_s13, %s1692_s28 }
  0x11   : > { %s432_s14 = scalar_lea.vmem %s1677_s0, %s1142_s12  ;;  %v1160_v20 = vld [vmem:[%s1684_s7 + $0x20] sm:$0xff]  ;;  %v932_v38 = vld [vmem:[%s1686_s9 + $0x8] sm:$0xff] }
  0x12   : > { %v436_v2 = vld [vmem:[%s432_s14] sm:$0xff]  ;;  %1314 = vmatpush3.bf16.msra.mxu0 %v1313_v15 }
  0x13   : > { %v447_v3 = vrot.slane %v436_v2, 7  ;;  %1315 = vmatprep.subr.bf16.mxu0 %v1396_v9  ;;  %1323 = vmatpush3.bf16.msra.mxu1 %v1322_v41  ;;  %v931_v37 = vld [vmem:[%s1686_s9] sm:$0xff] }
  0x14   : > { %1324 = vmatprep.subr.bf16.mxu1 %v1396_v9  ;;  %v1349_v41 = vpack.c.bf16 %v932_v38, %v931_v37 }
  0x15   : > { %v450_v4 = vsel %vm449_vm0, 0.0, %v447_v3 }
  0x16   : > { %453 = vperm.xlu0 %1377, %v450_v4   ;;  %1317 = vmatpush3.bf16.msra.mxu0 %v1316_v18  ;;  %v1153_v4 = vld [vmem:[%s1680_s3 + $0x60] sm:$0xff] }
  0x17   : > { %1330 = vmatprep.subr.bf16.mxu0 %v1396_v9  ;;  %v1337_v6 = vpack.c.bf16 %v1154_v5, %v1153_v4 }
  0x1a   : > { %463 = vperm.xlu0 %1377, %v436_v2   ;;  %v1152_v2 = vld [vmem:[%s1680_s3 + $0x58] sm:$0xff] }
  0x1b   : > { %v1334_v3 = vpack.c.bf16 %v1152_v2, %v1151_v0 }
  0x95   : > { %v454_v25 = vpop.permute.xlu0 %453 }
  0x96   : > { %v460_v26 = vmul.f32 %v459_v23, %v454_v25  ;;  %v1343_v23 = vpack.c.bf16 %v1161_v21, %v1160_v20  ;;  %v1346_v25 = vpack.c.bf16 %v1163_v24, %v1162_v22 }
  0x98   : > { %v461_v30 = vadd.f32 %v1143_v28, %v460_v26  ;;  %v1158_v26 = vld [vmem:[%s1681_s4 + $0x1] ss:$0 sm:$0xff] }
  0x99   : > { %v464_v29 = vpop.permute.xlu0 %463 }
  0x9a   : > { %v470_v31 = vmul.f32 %v469_v27, %v464_v29 }
  0x9c   : > { %v1528_v32 = vadd.f32 %v470_v31, %v461_v30 }
  0x9e   : > { %474 = vst.msk [vmem:[#allocation2 + $0x8] sm:$0xff] %vm472_vm1, %v1528_v32  ;;  %486 = vrot.lane.b32.xlu1 %v1528_v32, %s1398_s19 }
  0xa5   : > { %v484_v34 = vld [vmem:[#allocation2 + $0x7] sm:$0xff] }
 0x110   : > { %v487_v33 = vpop.permute.xlu1 %486 }
 0x111   : > { %v489_v35 = vsel %vm472_vm1, %v484_v34, %v487_v33 }
 0x112   : > { %1230 = vmatmul.mubr.msk.f32.vlgmr.msra.gmra.mrb[0].mxu0 %vm496_vm3, %v489_v35 }
 0x113   : > { %1270 = vmatprep.mubr.msk.f32.mxu0 %vm1397_vm2, %v1395_v8  ;;  %1332 = vmatpush3.bf16.msra.mxu0 %v1331_v1 }
 0x114   : > { %1333 = vmatprep.subr.bf16.mxu0 %v1396_v9 }
 0x117   : > { %1335 = vmatpush3.bf16.msra.mxu0 %v1334_v3 }
 0x118   : > { %1336 = vmatprep.subr.bf16.mxu0 %v1396_v9 }
 0x11b   : > { %1338 = vmatpush3.bf16.msra.mxu0 %v1337_v6 }
 0x11c   : > { %1339 = vmatprep.subr.bf16.mxu0 %v1396_v9 }
 0x11f   : > { %1341 = vmatpush3.bf16.msra.mxu0 %v1340_v11 }
 0x120   : > { %1354 = vmatprep.subr.bf16.mxu0 %v1396_v9 }
 0x1e5   : > { %v566_v43 = vpop.f32.mrb[0].mxu0 }
 0x1e6   : > { %v567_v44 = vadd.f32 %v1144_v42, %v566_v43  ;;  %v1231_v45 = vpop.f32.mrb[1].mxu0  ;;  %v933_v43 = vld [vmem:[%s1686_s9 + $0x10] sm:$0xff] }
 0x1e8   : > { %v570_v46 = vsub.f32 0.0, %v567_v44  ;;  %v934_v44 = vld [vmem:[%s1686_s9 + $0x18] sm:$0xff] }
 0x1e9   : > { %v1352_v45 = vpack.c.bf16 %v934_v44, %v933_v43 }
 0x1ea   : > { %v571_v47 = vmin.f32 %v570_v46, 30.0  ;;  %v1010_v46 = vld [vmem:[%s1688_s11] sm:$0xff] }
 0x1ec   : > { %v572_v48 = vmul.f32 1.442695, %v571_v47 }
 0x1ee   : > { %1378 = vpow2.f32 %v572_v48  ;;  %v668_v48 = vld [vmem:[%s1685_s8] sm:$0x1] }
 0x1f8   : > { %v1379_v49 = vpop.eup %1378 }
 0x1f9   : > { %v575_v50 = vmul.f32 %v1379_v49, %v1379_v49  ;;  %v574_v54 = vsub.f32 1.0, %v1379_v49  ;;  %v1164_v49 = vld [vmem:[%s1685_s8 + $0x1] sm:$0x1] }
 0x1fb   : > { %v576_v51 = vadd.f32 1.0, %v575_v50  ;;  %v1360_v50 = vadd.f32 %v1164_v49, %v668_v48 }
 0x1fd   : > { %1380 = vrcp.f32 %v576_v51 }
 0x207   : > { %v1381_v55 = vpop.eup %1380 }
 0x208   : > { %v578_v57 = vmul.f32 %v1381_v55, %v574_v54  ;;  %v1012_v54 = vld [vmem:[%s1688_s11 + $0x10] sm:$0xff] }
 0x20a   : > { %1241 = vmatmul.mubr.msk.f32.vlgmr.msra.gmra.mrb[0].mxu1 %vm472_vm1, %v578_v57  ;;  %v669_v61 = vrot.slane %v578_v57, 7 }
 0x20b   : > { %1326 = vmatpush3.bf16.msra.mxu1 %v1325_v56  ;;  %1251 = vmatprep.mubr.msk.f32.mxu1 %vm1397_vm2, %v1395_v8  ;;  %v935_v56 = vld [vmem:[%s1687_s10] sm:$0x1] }
 0x20c   : > { %1327 = vmatprep.subr.bf16.mxu1 %v1396_v9 }
 0x20f   : > { %1329 = vmatpush3.bf16.msra.mxu1 %v1328_v60 }
 0x210   : > { %1342 = vmatprep.subr.bf16.mxu1 %v1396_v9 }
 0x212   : > { %1252 = vmatmul.mubr.msk.f32.vlgmr.msra.gmra.mrb[2].mxu1 %vm472_vm1, %v669_v61  ;;  %v1014_v61 = vld [vmem:[#allocation3] sm:$0x1] }
 0x213   : > { %1281 = vmatprep.mubr.msk.f32.mxu1 %vm1397_vm2, %v1395_v8  ;;  %1344 = vmatpush3.bf16.msra.mxu1 %v1343_v23 }
 0x214   : > { %1345 = vmatprep.subr.bf16.mxu1 %v1396_v9 }
 0x217   : > { %1347 = vmatpush3.bf16.msra.mxu1 %v1346_v25 }
 0x218   : > { %1348 = vmatprep.subr.bf16.mxu1 %v1396_v9 }
 0x2dd   : > { %v659_v13 = vpop.f32.mrb[0].mxu1 }
 0x2de   : > { %v660_v14 = vadd.f32 %v1146_v12, %v659_v13  ;;  %v1242_v15 = vpop.f32.mrb[1].mxu1 }
 0x2e0   : > { %v663_v16 = vadd.f32 %v660_v14, %v1528_v32 }
 0x2e2   : > { %743 = vst.msk [vmem:[#allocation2 + $0x8] sm:$0xff] %vm472_vm1, %v663_v16  ;;  %757 = vrot.lane.b32.xlu1 %v663_v16, %s1398_s19 }
 0x2e9   : > { %v755_v18 = vld [vmem:[#allocation2 + $0x6] sm:$0xff] }
 0x354   : > { %v758_v17 = vpop.permute.xlu1 %757 }
 0x355   : > { %v760_v19 = vsel %vm472_vm1, %v755_v18, %v758_v17 }
 0x356   : > { %1271 = vmatmul.mubr.msk.f32.vlgmr.msra.gmra.mrb[2].mxu0 %vm496_vm3, %v760_v19 }
 0x357   : > { %1303 = vmatprep.mubr.msk.f32.mxu0 %vm1397_vm2, %v1395_v8 }
 0x429   : > { %v836_v27 = vpop.f32.mrb[2].mxu0 }
 0x42a   : > { %v837_v28 = vadd.f32 %v1158_v26, %v836_v27  ;;  %v1272_v29 = vpop.f32.mrb[3].mxu0 }
 0x42c   : > { %v840_v30 = vsub.f32 0.0, %v837_v28 }
 0x42e   : > { %v841_v31 = vmin.f32 %v840_v30, 30.0 }
 0x430   : > { %v842_v32 = vmul.f32 1.442695, %v841_v31 }
 0x432   : > { %1382 = vpow2.f32 %v842_v32 }
 0x43c   : > { %v1383_v33 = vpop.eup %1382 }
 0x43d   : > { %v845_v34 = vmul.f32 %v1383_v33, %v1383_v33  ;;  %v844_v36 = vsub.f32 1.0, %v1383_v33 }
 0x43f   : > { %v846_v35 = vadd.f32 1.0, %v845_v34 }
 0x441   : > { %1384 = vrcp.f32 %v846_v35 }
 0x44b   : > { %v1385_v39 = vpop.eup %1384 }
 0x44c   : > { %v848_v40 = vmul.f32 %v1385_v39, %v844_v36 }
 0x44e   : > { %v857_v42 = vrot.slane %v848_v40, 7 }
 0x450   : > { %1282 = vmatmul.mubr.msk.f32.vlgmr.msra.gmra.mrb[2].mxu1 %vm472_vm1, %v857_v42 }
 0x451   : > { %1350 = vmatpush3.bf16.msra.mxu1 %v1349_v41  ;;  %1292 = vmatprep.mubr.msk.f32.mxu1 %vm1397_vm2, %v1395_v8  ;;  %v1011_v8 = vld [vmem:[%s1688_s11 + $0x8] sm:$0xff] }
 0x452   : > { %1351 = vmatprep.subr.bf16.mxu1 %v1396_v9  ;;  %v1355_v47 = vpack.c.bf16 %v1011_v8, %v1010_v46 }
 0x454   : > { %1356 = vmatpush3.bf16.msra.mxu0 %v1355_v47 }
 0x455   : > { %1353 = vmatpush3.bf16.msra.mxu1 %v1352_v45  ;;  %1357 = vmatprep.subr.bf16.mxu0 %v1396_v9  ;;  %v1013_v9 = vld [vmem:[%s1688_s11 + $0x18] sm:$0xff] }
 0x456   : > { %v1358_v55 = vpack.c.bf16 %v1013_v9, %v1012_v54 }
 0x458   : > { %1359 = vmatpush3.bf16.msra.mxu0 %v1358_v55 }
 0x523   : > { %v926_v51 = vpop.f32.mrb[2].mxu1 }
 0x524   : > { %v1361_v52 = vadd.f32 %v1360_v50, %v926_v51  ;;  %v1283_v53 = vpop.f32.mrb[3].mxu1 }
 0x526   : > { %1293 = vmatmul.mubr.msk.f32.vlgmr.msra.gmra.mrb[4].mxu1 %vm472_vm1, %v1361_v52 }
 0x5f9   : > { %v1005_v57 = vpop.f32.mrb[4].mxu1 }
 0x5fa   : > { %v1006_v58 = vadd.f32 %v1005_v57, %v935_v56  ;;  %v1294_v59 = vpop.f32.mrb[5].mxu1 }
 0x5fc   : > { %v1009_v60 = vmax.f32 %v1006_v58, 0.0 }
 0x5fe   : > { %1304 = vmatmul.mubr.msk.f32.vlgmr.msra.gmra.mrb[4].mxu0 %vm472_vm1, %v1009_v60 }
 0x6d1   : > { %v1084_v62 = vpop.f32.mrb[4].mxu0 }
 0x6d2   : > { %v1085_v63 = vadd.f32 %v1084_v62, %v1014_v61  ;;  %v1305_v0 = vpop.f32.mrb[5].mxu0 }
 0x6d4   : > { %1089 = vst.msk [vmem:[%s435_s29] sm:$0x1] %vm1088_vm4, %v1085_v63 }
 0x6d5 PF: > { %s25_s27 = sadd.s32 1, %s1392_s27  }
 0x6d6   : > { %p22_p4 = scmp.ge.s32.totalorder %s25_s27, 4  }
 0x6d8   :  { %24 = sbr.rel (!%p22_p4) target bundleno = 3 (0x3), region = 106 }

</bundles_post_ra>
